<compile_context>
chip_gen: v7x
topology: tpu7x:2x2x1
jax: 0.10.0
libtpu: 0.0.40
codegen_flags: <defaults>
</compile_context>

<pallas_src>
import functools

import jax
import jax.numpy as jnp
from jax import lax
from jax.experimental import pallas as pl
from jax.experimental.pallas import tpu as pltpu

maxPool_indexes = (4, 9, 18, 27, 36)
maxPool_indexes_before_act = [x - 1 for x in maxPool_indexes]

VGG19_CFG = [64, 64, 'M', 128, 128, 'M', 256, 256, 256, 256, 'M',
             512, 512, 512, 512, 'M', 512, 512, 512, 512, 'M']


def make_vgg19_features():
    """Mirror of torchvision.models.vgg19().features layer list (kind, Cin, Cout)."""
    layers = []
    in_c = 3
    for v in VGG19_CFG:
        if v == 'M':
            layers.append(('maxpool', None, None))
        else:
            layers.append(('conv', in_c, v))
            layers.append(('relu', None, None))
            in_c = v
    return layers


# ----------------------------- fused conv3x3 kernel -----------------------------

def _conv3x3_kernel(x_ref, w_ref, b_ref, *rest, input_relu, th, emit_tap):
    """3x3 SAME conv with fused input-ReLU and optional NCHW-flat lane-dense tap.

    x_ref : (1, H, W, Cin)    f32 activation (un-padded)
    w_ref : (3, 3, Cin, TCO)  bf16 HWIO weights (Cout tile)
    b_ref : (1, TCO)          f32 bias
    o_ref : (1, H, W, TCO)    f32 conv output (pre-ReLU -- this is the tap value)
    tap_ref (optional) : (1, TCO, H*W) f32 NCHW-flattened copy of the output
    xcol_ref (scratch) : (3, H+2, W, Cin) bf16 -- dx-shifted, zero-padded input copies
    """
    if emit_tap:
        o_ref, tap_ref, xcol_ref = rest
    else:
        o_ref, xcol_ref = rest
        tap_ref = None

    H, W, tco = o_ref.shape[1], o_ref.shape[2], o_ref.shape[3]
    cin = x_ref.shape[3]

    x = x_ref[0]                                # (H, W, Cin) f32
    if input_relu:
        x = jnp.maximum(x, 0.0)                 # fused ReLU (f32, VPU -- v5e safe)
    xb = x.astype(jnp.bfloat16)                 # bf16 only at the MXU operand

    # Build the three dx-shifted, zero-padded copies once (the only relayout work).
    # Later slices in the matmul loop are leading-dim-only -> no per-matmul relayouts.
    zrow = jnp.zeros((1, W, cin), jnp.bfloat16)
    zcol = jnp.zeros((H, 1, cin), jnp.bfloat16)
    planes = (jnp.concatenate([zcol, xb[:, 0:W - 1, :]], axis=1),   # dx = 0
              xb,                                                   # dx = 1
              jnp.concatenate([xb[:, 1:W, :], zcol], axis=1))       # dx = 2
    for k in range(3):
        xcol_ref[k, 0:1, :, :] = zrow           # top halo row
        xcol_ref[k, 1:H + 1, :, :] = planes[k]
        xcol_ref[k, H + 1:H + 2, :, :] = zrow   # bottom halo row

    bias = b_ref[...]                           # (1, TCO) f32

    nrt = H // th
    for rt in range(nrt):                       # row chunks keep the f32 acc in vregs
        r0 = rt * th
        acc = jnp.zeros((th * W, tco), jnp.float32)
        for dy in range(3):
            for dx in range(3):
                lhs = xcol_ref[dx, r0 + dy:r0 + dy + th, :, :].reshape(th * W, cin)
                acc = acc + jnp.dot(lhs, w_ref[dy, dx],
                                    preferred_element_type=jnp.float32)
        acc = acc + bias
        o_ref[0, r0:r0 + th, :, :] = acc.reshape(th, W, tco)
        if emit_tap:
            # lane-dense NCHW-flat tap chunk: (TCO, th*W) at lane offset r0*W
            tap_ref[0, :, r0 * W:(r0 + th) * W] = acc.T


def conv3x3(x, w, b, *, input_relu, emit_tap):
    """x: (N,H,W,Cin) f32, w: (3,3,Cin,Cout) bf16, b: (1,Cout) f32.

    Returns (N,H,W,Cout) f32, plus (N,Cout,H*W) f32 NCHW-flat tap if emit_tap.
    """
    N, H, W, Cin = x.shape
    Cout = w.shape[-1]
    tco = Cout if Cout <= 256 else 256          # Cout tile (256 matches v6e/v7x MXU)
    assert Cout % tco == 0
    co_blocks = Cout // tco
    th = max(1, min(H, max(1, 128 // W)))       # row chunk: matmul M = th*W ~ 128
    while H % th:
        th -= 1

    kernel = functools.partial(_conv3x3_kernel, input_relu=input_relu,
                               th=th, emit_tap=emit_tap)

    out_shape = [jax.ShapeDtypeStruct((N, H, W, Cout), jnp.float32)]
    out_specs = [pl.BlockSpec((1, H, W, tco), lambda co, n: (n, 0, 0, co))]
    if emit_tap:
        out_shape.append(jax.ShapeDtypeStruct((N, Cout, H * W), jnp.float32))
        out_specs.append(pl.BlockSpec((1, tco, H * W), lambda co, n: (n, co, 0)))

    return pl.pallas_call(
        kernel,
        out_shape=tuple(out_shape) if emit_tap else out_shape[0],
        grid=(co_blocks, N),                    # Cout tile slowest: weights stay resident
        in_specs=[
            pl.BlockSpec((1, H, W, Cin), lambda co, n: (n, 0, 0, 0)),
            pl.BlockSpec((3, 3, Cin, tco), lambda co, n: (0, 0, 0, co)),
            pl.BlockSpec((1, tco), lambda co, n: (0, co)),
        ],
        out_specs=tuple(out_specs) if emit_tap else out_specs[0],
        scratch_shapes=[pltpu.VMEM((3, H + 2, W, Cin), jnp.bfloat16)],
        compiler_params=pltpu.CompilerParams(
            dimension_semantics=("parallel", "parallel")),
    )(x, w, b)


# ----------------------------- fused relu + maxpool kernel -----------------------------

def _maxpool2_relu_kernel(x_ref, o_ref):
    # x_ref: (1, H, W, C) pre-ReLU, o_ref: (1, H//2, W//2, C) = maxpool2(relu(x)).
    H, W = x_ref.shape[1], x_ref.shape[2]
    Ho, Wo, C = o_ref.shape[1], o_ref.shape[2], o_ref.shape[3]
    x = jnp.maximum(x_ref[0], 0.0)       # fused ReLU (f32)
    x = x.reshape(H, Wo, 2, C)
    x = jnp.max(x, axis=2)               # max over W pairs
    x = x.reshape(Ho, 2, Wo, C)
    o_ref[0] = jnp.max(x, axis=1)        # max over H pairs


def maxpool2_relu(x):
    N, H, W, C = x.shape
    Ho, Wo = H // 2, W // 2
    return pl.pallas_call(
        _maxpool2_relu_kernel,
        out_shape=jax.ShapeDtypeStruct((N, Ho, Wo, C), x.dtype),
        grid=(N,),
        in_specs=[pl.BlockSpec((1, H, W, C), lambda n: (n, 0, 0, 0))],
        out_specs=pl.BlockSpec((1, Ho, Wo, C), lambda n: (n, 0, 0, 0)),
        compiler_params=pltpu.CompilerParams(
            dimension_semantics=("parallel",)),
    )(x)


# ----------------------------- Model wrapper -----------------------------

class MaskedVGGPallas:
    """JAX/Pallas equivalent of MaskedVGG (deterministic He-initialized bf16 weights)."""

    def __init__(self, mask, key):
        self.intermediate_layers_kept = [
            maxPool_indexes_before_act[i]
            for i in range(len(maxPool_indexes_before_act)) if mask & (1 << i)
        ]
        full = make_vgg19_features()
        self.layers = full[: self.intermediate_layers_kept[-1]]
        self.params = []
        for (kind, cin, cout) in self.layers:
            if kind == 'conv':
                key, kw, kb = jax.random.split(key, 3)
                fan_in = 3 * 3 * cin
                w = jax.random.normal(kw, (3, 3, cin, cout), jnp.float32)
                w = (w * (2.0 / fan_in) ** 0.5).astype(jnp.bfloat16)   # bf16 MXU weights
                b = (jax.random.normal(kb, (cout,), jnp.float32) * 0.01).reshape(1, cout)
                self.params.append((w, b))
            else:
                self.params.append(None)

    def __call__(self, x_nchw):
        # x_nchw: (N, 3, H, W) float32 (PyTorch convention)
        n = x_nchw.shape[0]
        x = jnp.transpose(x_nchw, (0, 2, 3, 1))   # NCHW -> NHWC once (3-channel input)
        saved = []
        pending_relu = False                      # ReLU layers are deferred & fused
        for i, ((kind, _, _), p) in enumerate(zip(self.layers, self.params), 1):
            if kind == 'conv':
                w, b = p
                is_tap = i in self.intermediate_layers_kept   # taps always land on convs
                if is_tap:
                    x, tap = conv3x3(x, w, b, input_relu=pending_relu, emit_tap=True)
                    saved.append(tap.reshape(n, -1))          # already torch-NCHW-flat
                else:
                    x = conv3x3(x, w, b, input_relu=pending_relu, emit_tap=False)
                pending_relu = False
            elif kind == 'relu':
                pending_relu = True               # fused into next conv / maxpool kernel
            else:  # maxpool (in VGG it always follows a ReLU)
                assert pending_relu
                x = maxpool2_relu(x)
                pending_relu = False
        return jnp.concatenate(saved, axis=1)


# ----------------------------- pure-JAX reference -----------------------------

def ref_forward(model, x_nchw):
    """Layer-by-layer reference mirroring the torch module (and the kernel's
    bf16-operand / f32-accumulation numerics)."""
    x = jnp.transpose(x_nchw, (0, 2, 3, 1))       # NHWC
    saved = []
    for i, ((kind, _, _), p) in enumerate(zip(model.layers, model.params), 1):
        if kind == 'conv':
            w, b = p
            x = lax.conv_general_dilated(
                x.astype(jnp.bfloat16), w, window_strides=(1, 1), padding='SAME',
                dimension_numbers=('NHWC', 'HWIO', 'NHWC'),
                preferred_element_type=jnp.float32) + b
        elif kind == 'relu':
            x = jnp.maximum(x, 0.0)
        else:
            x = lax.reduce_window(x, -jnp.inf, lax.max,
                                  (1, 2, 2, 1), (1, 2, 2, 1), 'VALID')
        if i in model.intermediate_layers_kept:
            saved.append(jnp.transpose(x, (0, 3, 1, 2)).reshape(x.shape[0], -1))
    return jnp.concatenate(saved, axis=1)


if __name__ == "__main__":
    key = jax.random.PRNGKey(0)
    kparams, kx = jax.random.split(key)

    # taps before maxpool #1 and #2 -> layer 3 (64ch @ 16x16) and layer 8 (128ch @ 8x8)
    mask = 0b11
    model = MaskedVGGPallas(mask, kparams)

    N, C, H, W = 2, 3, 16, 16
    x = jax.random.normal(kx, (N, C, H, W), jnp.float32)

    out = jax.block_until_ready(model(x))

    expected_dim = 64 * H * W + 128 * (H // 2) * (W // 2)
    assert out.shape == (N, expected_dim), out.shape

    ref = ref_forward(model, x)
    err = float(jnp.max(jnp.abs(out - ref)))
    scale = float(jnp.max(jnp.abs(ref)))
    assert err <= 1e-2 * (1.0 + scale), (err, scale)

    print("KERNEL_OK")
</pallas_src>

<mosaic_0001>
module attributes {stable_mosaic.version = 11 : i64} {
  func.func @_conv3x3_kernel(%arg0: i32, %arg1: i32, %arg2: memref<1x16x16x3xf32, #tpu.memory_space<vmem>>, %arg3: memref<3x3x3x64xbf16, #tpu.memory_space<vmem>>, %arg4: memref<1x64xf32, #tpu.memory_space<vmem>>, %arg5: memref<1x16x16x64xf32, #tpu.memory_space<vmem>>, %arg6: memref<3x18x16x3xbf16, #tpu.memory_space<vmem>>) attributes {dimension_semantics = [#tpu.dimension_semantics<parallel>, #tpu.dimension_semantics<parallel>], iteration_bounds = array<i64: 1, 2>, scalar_prefetch = 0 : i64, scratch_operands = 1 : i64, tpu.core_type = #tpu.core_type<tc>, window_params = [{transform_indices = @transform_0, window_bounds = array<i64: 1, 16, 16, 3>}, {transform_indices = @transform_1, window_bounds = array<i64: 3, 3, 3, 64>}, {transform_indices = @transform_2, window_bounds = array<i64: 1, 64>}, {transform_indices = @transform_3, window_bounds = array<i64: 1, 16, 16, 64>}]} {
    %c0 = arith.constant 0 : index
    %c0_0 = arith.constant 0 : index
    %c0_1 = arith.constant 0 : index
    %c0_2 = arith.constant 0 : index
    %0 = vector.load %arg2[%c0, %c0_0, %c0_1, %c0_2] : memref<1x16x16x3xf32, #tpu.memory_space<vmem>>, vector<1x16x16x3xf32>
    %1 = vector.shape_cast %0 : vector<1x16x16x3xf32> to vector<16x16x3xf32>
    %2 = arith.truncf %1 : vector<16x16x3xf32> to vector<16x16x3xbf16>
    %cst = arith.constant 0.000000e+00 : bf16
    %3 = vector.broadcast %cst : bf16 to vector<1x16x3xbf16>
    %cst_3 = arith.constant 0.000000e+00 : bf16
    %4 = vector.broadcast %cst_3 : bf16 to vector<16x1x3xbf16>
    %5 = vector.extract_strided_slice %2 {offsets = [0, 0, 0], sizes = [16, 15, 3], strides = [1, 1, 1]} : vector<16x16x3xbf16> to vector<16x15x3xbf16>
    %6 = tpu.concatenate %4, %5 in 1 : vector<16x1x3xbf16>, vector<16x15x3xbf16> -> vector<16x16x3xbf16>
    %7 = vector.extract_strided_slice %2 {offsets = [0, 1, 0], sizes = [16, 15, 3], strides = [1, 1, 1]} : vector<16x16x3xbf16> to vector<16x15x3xbf16>
    %8 = tpu.concatenate %7, %4 in 1 : vector<16x15x3xbf16>, vector<16x1x3xbf16> -> vector<16x16x3xbf16>
    %c0_4 = arith.constant 0 : index
    %c0_5 = arith.constant 0 : index
    %c0_6 = arith.constant 0 : index
    %c0_7 = arith.constant 0 : index
    %9 = vector.load %arg6[%c0_4, %c0_5, %c0_6, %c0_7] : memref<3x18x16x3xbf16, #tpu.memory_space<vmem>>, vector<1x1x16x3xbf16>
    %10 = vector.shape_cast %9 : vector<1x1x16x3xbf16> to vector<1x16x3xbf16>
    %11 = vector.shape_cast %3 : vector<1x16x3xbf16> to vector<1x1x16x3xbf16>
    tpu.vector_store %arg6[%c0_4, %c0_5, %c0_6, %c0_7], %11 {strides = array<i32>} : memref<3x18x16x3xbf16, #tpu.memory_space<vmem>>, vector<1x1x16x3xbf16>,
    %c0_8 = arith.constant 0 : index
    %c1 = arith.constant 1 : index
    %c0_9 = arith.constant 0 : index
    %c0_10 = arith.constant 0 : index
    %12 = vector.load %arg6[%c0_8, %c1, %c0_9, %c0_10] : memref<3x18x16x3xbf16, #tpu.memory_space<vmem>>, vector<1x16x16x3xbf16>
    %13 = vector.shape_cast %12 : vector<1x16x16x3xbf16> to vector<16x16x3xbf16>
    %14 = vector.shape_cast %6 : vector<16x16x3xbf16> to vector<1x16x16x3xbf16>
    tpu.vector_store %arg6[%c0_8, %c1, %c0_9, %c0_10], %14 {strides = array<i32>} : memref<3x18x16x3xbf16, #tpu.memory_space<vmem>>, vector<1x16x16x3xbf16>,
    %c0_11 = arith.constant 0 : index
    %c17 = arith.constant 17 : index
    %c0_12 = arith.constant 0 : index
    %c0_13 = arith.constant 0 : index
    %15 = vector.load %arg6[%c0_11, %c17, %c0_12, %c0_13] : memref<3x18x16x3xbf16, #tpu.memory_space<vmem>>, vector<1x1x16x3xbf16>
    %16 = vector.shape_cast %15 : vector<1x1x16x3xbf16> to vector<1x16x3xbf16>
    %17 = vector.shape_cast %3 : vector<1x16x3xbf16> to vector<1x1x16x3xbf16>
    tpu.vector_store %arg6[%c0_11, %c17, %c0_12, %c0_13], %17 {strides = array<i32>} : memref<3x18x16x3xbf16, #tpu.memory_space<vmem>>, vector<1x1x16x3xbf16>,
    %c1_14 = arith.constant 1 : index
    %c0_15 = arith.constant 0 : index
    %c0_16 = arith.constant 0 : index
    %c0_17 = arith.constant 0 : index
    %18 = vector.load %arg6[%c1_14, %c0_15, %c0_16, %c0_17] : memref<3x18x16x3xbf16, #tpu.memory_space<vmem>>, vector<1x1x16x3xbf16>
    %19 = vector.shape_cast %18 : vector<1x1x16x3xbf16> to vector<1x16x3xbf16>
    %20 = vector.shape_cast %3 : vector<1x16x3xbf16> to vector<1x1x16x3xbf16>
    tpu.vector_store %arg6[%c1_14, %c0_15, %c0_16, %c0_17], %20 {strides = array<i32>} : memref<3x18x16x3xbf16, #tpu.memory_space<vmem>>, vector<1x1x16x3xbf16>,
    %c1_18 = arith.constant 1 : index
    %c1_19 = arith.constant 1 : index
    %c0_20 = arith.constant 0 : index
    %c0_21 = arith.constant 0 : index
    %21 = vector.load %arg6[%c1_18, %c1_19, %c0_20, %c0_21] : memref<3x18x16x3xbf16, #tpu.memory_space<vmem>>, vector<1x16x16x3xbf16>
    %22 = vector.shape_cast %21 : vector<1x16x16x3xbf16> to vector<16x16x3xbf16>
    %23 = vector.shape_cast %2 : vector<16x16x3xbf16> to vector<1x16x16x3xbf16>
    tpu.vector_store %arg6[%c1_18, %c1_19, %c0_20, %c0_21], %23 {strides = array<i32>} : memref<3x18x16x3xbf16, #tpu.memory_space<vmem>>, vector<1x16x16x3xbf16>,
    %c1_22 = arith.constant 1 : index
    %c17_23 = arith.constant 17 : index
    %c0_24 = arith.constant 0 : index
    %c0_25 = arith.constant 0 : index
    %24 = vector.load %arg6[%c1_22, %c17_23, %c0_24, %c0_25] : memref<3x18x16x3xbf16, #tpu.memory_space<vmem>>, vector<1x1x16x3xbf16>
    %25 = vector.shape_cast %24 : vector<1x1x16x3xbf16> to vector<1x16x3xbf16>
    %26 = vector.shape_cast %3 : vector<1x16x3xbf16> to vector<1x1x16x3xbf16>
    tpu.vector_store %arg6[%c1_22, %c17_23, %c0_24, %c0_25], %26 {strides = array<i32>} : memref<3x18x16x3xbf16, #tpu.memory_space<vmem>>, vector<1x1x16x3xbf16>,
    %c2 = arith.constant 2 : index
    %c0_26 = arith.constant 0 : index
    %c0_27 = arith.constant 0 : index
    %c0_28 = arith.constant 0 : index
    %27 = vector.load %arg6[%c2, %c0_26, %c0_27, %c0_28] : memref<3x18x16x3xbf16, #tpu.memory_space<vmem>>, vector<1x1x16x3xbf16>
    %28 = vector.shape_cast %27 : vector<1x1x16x3xbf16> to vector<1x16x3xbf16>
    %29 = vector.shape_cast %3 : vector<1x16x3xbf16> to vector<1x1x16x3xbf16>
    tpu.vector_store %arg6[%c2, %c0_26, %c0_27, %c0_28], %29 {strides = array<i32>} : memref<3x18x16x3xbf16, #tpu.memory_space<vmem>>, vector<1x1x16x3xbf16>,
    %c2_29 = arith.constant 2 : index
    %c1_30 = arith.constant 1 : index
    %c0_31 = arith.constant 0 : index
    %c0_32 = arith.constant 0 : index
    %30 = vector.load %arg6[%c2_29, %c1_30, %c0_31, %c0_32] : memref<3x18x16x3xbf16, #tpu.memory_space<vmem>>, vector<1x16x16x3xbf16>
    %31 = vector.shape_cast %30 : vector<1x16x16x3xbf16> to vector<16x16x3xbf16>
    %32 = vector.shape_cast %8 : vector<16x16x3xbf16> to vector<1x16x16x3xbf16>
    tpu.vector_store %arg6[%c2_29, %c1_30, %c0_31, %c0_32], %32 {strides = array<i32>} : memref<3x18x16x3xbf16, #tpu.memory_space<vmem>>, vector<1x16x16x3xbf16>,
    %c2_33 = arith.constant 2 : index
    %c17_34 = arith.constant 17 : index
    %c0_35 = arith.constant 0 : index
    %c0_36 = arith.constant 0 : index
    %33 = vector.load %arg6[%c2_33, %c17_34, %c0_35, %c0_36] : memref<3x18x16x3xbf16, #tpu.memory_space<vmem>>, vector<1x1x16x3xbf16>
    %34 = vector.shape_cast %33 : vector<1x1x16x3xbf16> to vector<1x16x3xbf16>
    %35 = vector.shape_cast %3 : vector<1x16x3xbf16> to vector<1x1x16x3xbf16>
    tpu.vector_store %arg6[%c2_33, %c17_34, %c0_35, %c0_36], %35 {strides = array<i32>} : memref<3x18x16x3xbf16, #tpu.memory_space<vmem>>, vector<1x1x16x3xbf16>,
    %c0_37 = arith.constant 0 : index
    %c0_38 = arith.constant 0 : index
    %36 = vector.load %arg4[%c0_37, %c0_38] : memref<1x64xf32, #tpu.memory_space<vmem>>, vector<1x64xf32>
    %cst_39 = arith.constant 0.000000e+00 : f32
    %37 = vector.broadcast %cst_39 : f32 to vector<128x64xf32>
    %c0_40 = arith.constant 0 : index
    %c0_41 = arith.constant 0 : index
    %c0_42 = arith.constant 0 : index
    %c0_43 = arith.constant 0 : index
    %38 = vector.load %arg6[%c0_40, %c0_41, %c0_42, %c0_43] : memref<3x18x16x3xbf16, #tpu.memory_space<vmem>>, vector<1x8x16x3xbf16>
    %39 = vector.shape_cast %38 : vector<1x8x16x3xbf16> to vector<8x16x3xbf16>
    %40 = vector.shape_cast %39 : vector<8x16x3xbf16> to vector<128x3xbf16>
    %c0_44 = arith.constant 0 : index
    %c0_45 = arith.constant 0 : index
    %c0_46 = arith.constant 0 : index
    %c0_47 = arith.constant 0 : index
    %41 = vector.load %arg3[%c0_44, %c0_45, %c0_46, %c0_47] : memref<3x3x3x64xbf16, #tpu.memory_space<vmem>>, vector<1x1x3x64xbf16>
    %42 = vector.shape_cast %41 : vector<1x1x3x64xbf16> to vector<3x64xbf16>
    %cst_48 = arith.constant dense<0.000000e+00> : vector<128x64xf32>
    %43 = tpu.matmul %40, %42, %cst_48 {dimension_numbers = #tpu.dot_dimension_numbers<[1], [0], [0], [1], [0, 0, 1, 1], [], []>} : vector<128x3xbf16>, vector<3x64xbf16>, vector<128x64xf32> -> vector<128x64xf32>
    %44 = arith.addf %37, %43 : vector<128x64xf32>
    %c1_49 = arith.constant 1 : index
    %c0_50 = arith.constant 0 : index
    %c0_51 = arith.constant 0 : index
    %c0_52 = arith.constant 0 : index
    %45 = vector.load %arg6[%c1_49, %c0_50, %c0_51, %c0_52] : memref<3x18x16x3xbf16, #tpu.memory_space<vmem>>, vector<1x8x16x3xbf16>
    %46 = vector.shape_cast %45 : vector<1x8x16x3xbf16> to vector<8x16x3xbf16>
    %47 = vector.shape_cast %46 : vector<8x16x3xbf16> to vector<128x3xbf16>
    %c0_53 = arith.constant 0 : index
    %c1_54 = arith.constant 1 : index
    %c0_55 = arith.constant 0 : index
    %c0_56 = arith.constant 0 : index
    %48 = vector.load %arg3[%c0_53, %c1_54, %c0_55, %c0_56] : memref<3x3x3x64xbf16, #tpu.memory_space<vmem>>, vector<1x1x3x64xbf16>
    %49 = vector.shape_cast %48 : vector<1x1x3x64xbf16> to vector<3x64xbf16>
    %cst_57 = arith.constant dense<0.000000e+00> : vector<128x64xf32>
    %50 = tpu.matmul %47, %49, %cst_57 {dimension_numbers = #tpu.dot_dimension_numbers<[1], [0], [0], [1], [0, 0, 1, 1], [], []>} : vector<128x3xbf16>, vector<3x64xbf16>, vector<128x64xf32> -> vector<128x64xf32>
    %51 = arith.addf %44, %50 : vector<128x64xf32>
    %c2_58 = arith.constant 2 : index
    %c0_59 = arith.constant 0 : index
    %c0_60 = arith.constant 0 : index
    %c0_61 = arith.constant 0 : index
    %52 = vector.load %arg6[%c2_58, %c0_59, %c0_60, %c0_61] : memref<3x18x16x3xbf16, #tpu.memory_space<vmem>>, vector<1x8x16x3xbf16>
    %53 = vector.shape_cast %52 : vector<1x8x16x3xbf16> to vector<8x16x3xbf16>
    %54 = vector.shape_cast %53 : vector<8x16x3xbf16> to vector<128x3xbf16>
    %c0_62 = arith.constant 0 : index
    %c2_63 = arith.constant 2 : index
    %c0_64 = arith.constant 0 : index
    %c0_65 = arith.constant 0 : index
    %55 = vector.load %arg3[%c0_62, %c2_63, %c0_64, %c0_65] : memref<3x3x3x64xbf16, #tpu.memory_space<vmem>>, vector<1x1x3x64xbf16>
    %56 = vector.shape_cast %55 : vector<1x1x3x64xbf16> to vector<3x64xbf16>
    %cst_66 = arith.constant dense<0.000000e+00> : vector<128x64xf32>
    %57 = tpu.matmul %54, %56, %cst_66 {dimension_numbers = #tpu.dot_dimension_numbers<[1], [0], [0], [1], [0, 0, 1, 1], [], []>} : vector<128x3xbf16>, vector<3x64xbf16>, vector<128x64xf32> -> vector<128x64xf32>
    %58 = arith.addf %51, %57 : vector<128x64xf32>
    %c0_67 = arith.constant 0 : index
    %c1_68 = arith.constant 1 : index
    %c0_69 = arith.constant 0 : index
    %c0_70 = arith.constant 0 : index
    %59 = vector.load %arg6[%c0_67, %c1_68, %c0_69, %c0_70] : memref<3x18x16x3xbf16, #tpu.memory_space<vmem>>, vector<1x8x16x3xbf16>
    %60 = vector.shape_cast %59 : vector<1x8x16x3xbf16> to vector<8x16x3xbf16>
    %61 = vector.shape_cast %60 : vector<8x16x3xbf16> to vector<128x3xbf16>
    %c1_71 = arith.constant 1 : index
    %c0_72 = arith.constant 0 : index
    %c0_73 = arith.constant 0 : index
    %c0_74 = arith.constant 0 : index
    %62 = vector.load %arg3[%c1_71, %c0_72, %c0_73, %c0_74] : memref<3x3x3x64xbf16, #tpu.memory_space<vmem>>, vector<1x1x3x64xbf16>
    %63 = vector.shape_cast %62 : vector<1x1x3x64xbf16> to vector<3x64xbf16>
    %cst_75 = arith.constant dense<0.000000e+00> : vector<128x64xf32>
    %64 = tpu.matmul %61, %63, %cst_75 {dimension_numbers = #tpu.dot_dimension_numbers<[1], [0], [0], [1], [0, 0, 1, 1], [], []>} : vector<128x3xbf16>, vector<3x64xbf16>, vector<128x64xf32> -> vector<128x64xf32>
    %65 = arith.addf %58, %64 : vector<128x64xf32>
    %c1_76 = arith.constant 1 : index
    %c1_77 = arith.constant 1 : index
    %c0_78 = arith.constant 0 : index
    %c0_79 = arith.constant 0 : index
    %66 = vector.load %arg6[%c1_76, %c1_77, %c0_78, %c0_79] : memref<3x18x16x3xbf16, #tpu.memory_space<vmem>>, vector<1x8x16x3xbf16>
    %67 = vector.shape_cast %66 : vector<1x8x16x3xbf16> to vector<8x16x3xbf16>
    %68 = vector.shape_cast %67 : vector<8x16x3xbf16> to vector<128x3xbf16>
    %c1_80 = arith.constant 1 : index
    %c1_81 = arith.constant 1 : index
    %c0_82 = arith.constant 0 : index
    %c0_83 = arith.constant 0 : index
    %69 = vector.load %arg3[%c1_80, %c1_81, %c0_82, %c0_83] : memref<3x3x3x64xbf16, #tpu.memory_space<vmem>>, vector<1x1x3x64xbf16>
    %70 = vector.shape_cast %69 : vector<1x1x3x64xbf16> to vector<3x64xbf16>
    %cst_84 = arith.constant dense<0.000000e+00> : vector<128x64xf32>
    %71 = tpu.matmul %68, %70, %cst_84 {dimension_numbers = #tpu.dot_dimension_numbers<[1], [0], [0], [1], [0, 0, 1, 1], [], []>} : vector<128x3xbf16>, vector<3x64xbf16>, vector<128x64xf32> -> vector<128x64xf32>
    %72 = arith.addf %65, %71 : vector<128x64xf32>
    %c2_85 = arith.constant 2 : index
    %c1_86 = arith.constant 1 : index
    %c0_87 = arith.constant 0 : index
    %c0_88 = arith.constant 0 : index
    %73 = vector.load %arg6[%c2_85, %c1_86, %c0_87, %c0_88] : memref<3x18x16x3xbf16, #tpu.memory_space<vmem>>, vector<1x8x16x3xbf16>
    %74 = vector.shape_cast %73 : vector<1x8x16x3xbf16> to vector<8x16x3xbf16>
    %75 = vector.shape_cast %74 : vector<8x16x3xbf16> to vector<128x3xbf16>
    %c1_89 = arith.constant 1 : index
    %c2_90 = arith.constant 2 : index
    %c0_91 = arith.constant 0 : index
    %c0_92 = arith.constant 0 : index
    %76 = vector.load %arg3[%c1_89, %c2_90, %c0_91, %c0_92] : memref<3x3x3x64xbf16, #tpu.memory_space<vmem>>, vector<1x1x3x64xbf16>
    %77 = vector.shape_cast %76 : vector<1x1x3x64xbf16> to vector<3x64xbf16>
    %cst_93 = arith.constant dense<0.000000e+00> : vector<128x64xf32>
    %78 = tpu.matmul %75, %77, %cst_93 {dimension_numbers = #tpu.dot_dimension_numbers<[1], [0], [0], [1], [0, 0, 1, 1], [], []>} : vector<128x3xbf16>, vector<3x64xbf16>, vector<128x64xf32> -> vector<128x64xf32>
    %79 = arith.addf %72, %78 : vector<128x64xf32>
    %c0_94 = arith.constant 0 : index
    %c2_95 = arith.constant 2 : index
    %c0_96 = arith.constant 0 : index
    %c0_97 = arith.constant 0 : index
    %80 = vector.load %arg6[%c0_94, %c2_95, %c0_96, %c0_97] : memref<3x18x16x3xbf16, #tpu.memory_space<vmem>>, vector<1x8x16x3xbf16>
    %81 = vector.shape_cast %80 : vector<1x8x16x3xbf16> to vector<8x16x3xbf16>
    %82 = vector.shape_cast %81 : vector<8x16x3xbf16> to vector<128x3xbf16>
    %c2_98 = arith.constant 2 : index
    %c0_99 = arith.constant 0 : index
    %c0_100 = arith.constant 0 : index
    %c0_101 = arith.constant 0 : index
    %83 = vector.load %arg3[%c2_98, %c0_99, %c0_100, %c0_101] : memref<3x3x3x64xbf16, #tpu.memory_space<vmem>>, vector<1x1x3x64xbf16>
    %84 = vector.shape_cast %83 : vector<1x1x3x64xbf16> to vector<3x64xbf16>
    %cst_102 = arith.constant dense<0.000000e+00> : vector<128x64xf32>
    %85 = tpu.matmul %82, %84, %cst_102 {dimension_numbers = #tpu.dot_dimension_numbers<[1], [0], [0], [1], [0, 0, 1, 1], [], []>} : vector<128x3xbf16>, vector<3x64xbf16>, vector<128x64xf32> -> vector<128x64xf32>
    %86 = arith.addf %79, %85 : vector<128x64xf32>
    %c1_103 = arith.constant 1 : index
    %c2_104 = arith.constant 2 : index
    %c0_105 = arith.constant 0 : index
    %c0_106 = arith.constant 0 : index
    %87 = vector.load %arg6[%c1_103, %c2_104, %c0_105, %c0_106] : memref<3x18x16x3xbf16, #tpu.memory_space<vmem>>, vector<1x8x16x3xbf16>
    %88 = vector.shape_cast %87 : vector<1x8x16x3xbf16> to vector<8x16x3xbf16>
    %89 = vector.shape_cast %88 : vector<8x16x3xbf16> to vector<128x3xbf16>
    %c2_107 = arith.constant 2 : index
    %c1_108 = arith.constant 1 : index
    %c0_109 = arith.constant 0 : index
    %c0_110 = arith.constant 0 : index
    %90 = vector.load %arg3[%c2_107, %c1_108, %c0_109, %c0_110] : memref<3x3x3x64xbf16, #tpu.memory_space<vmem>>, vector<1x1x3x64xbf16>
    %91 = vector.shape_cast %90 : vector<1x1x3x64xbf16> to vector<3x64xbf16>
    %cst_111 = arith.constant dense<0.000000e+00> : vector<128x64xf32>
    %92 = tpu.matmul %89, %91, %cst_111 {dimension_numbers = #tpu.dot_dimension_numbers<[1], [0], [0], [1], [0, 0, 1, 1], [], []>} : vector<128x3xbf16>, vector<3x64xbf16>, vector<128x64xf32> -> vector<128x64xf32>
    %93 = arith.addf %86, %92 : vector<128x64xf32>
    %c2_112 = arith.constant 2 : index
    %c2_113 = arith.constant 2 : index
    %c0_114 = arith.constant 0 : index
    %c0_115 = arith.constant 0 : index
    %94 = vector.load %arg6[%c2_112, %c2_113, %c0_114, %c0_115] : memref<3x18x16x3xbf16, #tpu.memory_space<vmem>>, vector<1x8x16x3xbf16>
    %95 = vector.shape_cast %94 : vector<1x8x16x3xbf16> to vector<8x16x3xbf16>
    %96 = vector.shape_cast %95 : vector<8x16x3xbf16> to vector<128x3xbf16>
    %c2_116 = arith.constant 2 : index
    %c2_117 = arith.constant 2 : index
    %c0_118 = arith.constant 0 : index
    %c0_119 = arith.constant 0 : index
    %97 = vector.load %arg3[%c2_116, %c2_117, %c0_118, %c0_119] : memref<3x3x3x64xbf16, #tpu.memory_space<vmem>>, vector<1x1x3x64xbf16>
    %98 = vector.shape_cast %97 : vector<1x1x3x64xbf16> to vector<3x64xbf16>
    %cst_120 = arith.constant dense<0.000000e+00> : vector<128x64xf32>
    %99 = tpu.matmul %96, %98, %cst_120 {dimension_numbers = #tpu.dot_dimension_numbers<[1], [0], [0], [1], [0, 0, 1, 1], [], []>} : vector<128x3xbf16>, vector<3x64xbf16>, vector<128x64xf32> -> vector<128x64xf32>
    %100 = arith.addf %93, %99 : vector<128x64xf32>
    %101 = vector.broadcast %36 : vector<1x64xf32> to vector<128x64xf32>
    %102 = arith.addf %100, %101 : vector<128x64xf32>
    %103 = vector.shape_cast %102 : vector<128x64xf32> to vector<8x16x64xf32>
    %c0_121 = arith.constant 0 : index
    %c0_122 = arith.constant 0 : index
    %c0_123 = arith.constant 0 : index
    %c0_124 = arith.constant 0 : index
    %104 = vector.load %arg5[%c0_121, %c0_122, %c0_123, %c0_124] : memref<1x16x16x64xf32, #tpu.memory_space<vmem>>, vector<1x8x16x64xf32>
    %105 = vector.shape_cast %104 : vector<1x8x16x64xf32> to vector<8x16x64xf32>
    %106 = vector.shape_cast %103 : vector<8x16x64xf32> to vector<1x8x16x64xf32>
    tpu.vector_store %arg5[%c0_121, %c0_122, %c0_123, %c0_124], %106 {strides = array<i32>} : memref<1x16x16x64xf32, #tpu.memory_space<vmem>>, vector<1x8x16x64xf32>,
    %cst_125 = arith.constant 0.000000e+00 : f32
    %107 = vector.broadcast %cst_125 : f32 to vector<128x64xf32>
    %c0_126 = arith.constant 0 : index
    %c8 = arith.constant 8 : index
    %c0_127 = arith.constant 0 : index
    %c0_128 = arith.constant 0 : index
    %108 = vector.load %arg6[%c0_126, %c8, %c0_127, %c0_128] : memref<3x18x16x3xbf16, #tpu.memory_space<vmem>>, vector<1x8x16x3xbf16>
    %109 = vector.shape_cast %108 : vector<1x8x16x3xbf16> to vector<8x16x3xbf16>
    %110 = vector.shape_cast %109 : vector<8x16x3xbf16> to vector<128x3xbf16>
    %c0_129 = arith.constant 0 : index
    %c0_130 = arith.constant 0 : index
    %c0_131 = arith.constant 0 : index
    %c0_132 = arith.constant 0 : index
    %111 = vector.load %arg3[%c0_129, %c0_130, %c0_131, %c0_132] : memref<3x3x3x64xbf16, #tpu.memory_space<vmem>>, vector<1x1x3x64xbf16>
    %112 = vector.shape_cast %111 : vector<1x1x3x64xbf16> to vector<3x64xbf16>
    %cst_133 = arith.constant dense<0.000000e+00> : vector<128x64xf32>
    %113 = tpu.matmul %110, %112, %cst_133 {dimension_numbers = #tpu.dot_dimension_numbers<[1], [0], [0], [1], [0, 0, 1, 1], [], []>} : vector<128x3xbf16>, vector<3x64xbf16>, vector<128x64xf32> -> vector<128x64xf32>
    %114 = arith.addf %107, %113 : vector<128x64xf32>
    %c1_134 = arith.constant 1 : index
    %c8_135 = arith.constant 8 : index
    %c0_136 = arith.constant 0 : index
    %c0_137 = arith.constant 0 : index
    %115 = vector.load %arg6[%c1_134, %c8_135, %c0_136, %c0_137] : memref<3x18x16x3xbf16, #tpu.memory_space<vmem>>, vector<1x8x16x3xbf16>
    %116 = vector.shape_cast %115 : vector<1x8x16x3xbf16> to vector<8x16x3xbf16>
    %117 = vector.shape_cast %116 : vector<8x16x3xbf16> to vector<128x3xbf16>
    %c0_138 = arith.constant 0 : index
    %c1_139 = arith.constant 1 : index
    %c0_140 = arith.constant 0 : index
    %c0_141 = arith.constant 0 : index
    %118 = vector.load %arg3[%c0_138, %c1_139, %c0_140, %c0_141] : memref<3x3x3x64xbf16, #tpu.memory_space<vmem>>, vector<1x1x3x64xbf16>
    %119 = vector.shape_cast %118 : vector<1x1x3x64xbf16> to vector<3x64xbf16>
    %cst_142 = arith.constant dense<0.000000e+00> : vector<128x64xf32>
    %120 = tpu.matmul %117, %119, %cst_142 {dimension_numbers = #tpu.dot_dimension_numbers<[1], [0], [0], [1], [0, 0, 1, 1], [], []>} : vector<128x3xbf16>, vector<3x64xbf16>, vector<128x64xf32> -> vector<128x64xf32>
    %121 = arith.addf %114, %120 : vector<128x64xf32>
    %c2_143 = arith.constant 2 : index
    %c8_144 = arith.constant 8 : index
    %c0_145 = arith.constant 0 : index
    %c0_146 = arith.constant 0 : index
    %122 = vector.load %arg6[%c2_143, %c8_144, %c0_145, %c0_146] : memref<3x18x16x3xbf16, #tpu.memory_space<vmem>>, vector<1x8x16x3xbf16>
    %123 = vector.shape_cast %122 : vector<1x8x16x3xbf16> to vector<8x16x3xbf16>
    %124 = vector.shape_cast %123 : vector<8x16x3xbf16> to vector<128x3xbf16>
    %c0_147 = arith.constant 0 : index
    %c2_148 = arith.constant 2 : index
    %c0_149 = arith.constant 0 : index
    %c0_150 = arith.constant 0 : index
    %125 = vector.load %arg3[%c0_147, %c2_148, %c0_149, %c0_150] : memref<3x3x3x64xbf16, #tpu.memory_space<vmem>>, vector<1x1x3x64xbf16>
    %126 = vector.shape_cast %125 : vector<1x1x3x64xbf16> to vector<3x64xbf16>
    %cst_151 = arith.constant dense<0.000000e+00> : vector<128x64xf32>
    %127 = tpu.matmul %124, %126, %cst_151 {dimension_numbers = #tpu.dot_dimension_numbers<[1], [0], [0], [1], [0, 0, 1, 1], [], []>} : vector<128x3xbf16>, vector<3x64xbf16>, vector<128x64xf32> -> vector<128x64xf32>
    %128 = arith.addf %121, %127 : vector<128x64xf32>
    %c0_152 = arith.constant 0 : index
    %c9 = arith.constant 9 : index
    %c0_153 = arith.constant 0 : index
    %c0_154 = arith.constant 0 : index
    %129 = vector.load %arg6[%c0_152, %c9, %c0_153, %c0_154] : memref<3x18x16x3xbf16, #tpu.memory_space<vmem>>, vector<1x8x16x3xbf16>
    %130 = vector.shape_cast %129 : vector<1x8x16x3xbf16> to vector<8x16x3xbf16>
    %131 = vector.shape_cast %130 : vector<8x16x3xbf16> to vector<128x3xbf16>
    %c1_155 = arith.constant 1 : index
    %c0_156 = arith.constant 0 : index
    %c0_157 = arith.constant 0 : index
    %c0_158 = arith.constant 0 : index
    %132 = vector.load %arg3[%c1_155, %c0_156, %c0_157, %c0_158] : memref<3x3x3x64xbf16, #tpu.memory_space<vmem>>, vector<1x1x3x64xbf16>
    %133 = vector.shape_cast %132 : vector<1x1x3x64xbf16> to vector<3x64xbf16>
    %cst_159 = arith.constant dense<0.000000e+00> : vector<128x64xf32>
    %134 = tpu.matmul %131, %133, %cst_159 {dimension_numbers = #tpu.dot_dimension_numbers<[1], [0], [0], [1], [0, 0, 1, 1], [], []>} : vector<128x3xbf16>, vector<3x64xbf16>, vector<128x64xf32> -> vector<128x64xf32>
    %135 = arith.addf %128, %134 : vector<128x64xf32>
    %c1_160 = arith.constant 1 : index
    %c9_161 = arith.constant 9 : index
    %c0_162 = arith.constant 0 : index
    %c0_163 = arith.constant 0 : index
    %136 = vector.load %arg6[%c1_160, %c9_161, %c0_162, %c0_163] : memref<3x18x16x3xbf16, #tpu.memory_space<vmem>>, vector<1x8x16x3xbf16>
    %137 = vector.shape_cast %136 : vector<1x8x16x3xbf16> to vector<8x16x3xbf16>
    %138 = vector.shape_cast %137 : vector<8x16x3xbf16> to vector<128x3xbf16>
    %c1_164 = arith.constant 1 : index
    %c1_165 = arith.constant 1 : index
    %c0_166 = arith.constant 0 : index
    %c0_167 = arith.constant 0 : index
    %139 = vector.load %arg3[%c1_164, %c1_165, %c0_166, %c0_167] : memref<3x3x3x64xbf16, #tpu.memory_space<vmem>>, vector<1x1x3x64xbf16>
    %140 = vector.shape_cast %139 : vector<1x1x3x64xbf16> to vector<3x64xbf16>
    %cst_168 = arith.constant dense<0.000000e+00> : vector<128x64xf32>
    %141 = tpu.matmul %138, %140, %cst_168 {dimension_numbers = #tpu.dot_dimension_numbers<[1], [0], [0], [1], [0, 0, 1, 1], [], []>} : vector<128x3xbf16>, vector<3x64xbf16>, vector<128x64xf32> -> vector<128x64xf32>
    %142 = arith.addf %135, %141 : vector<128x64xf32>
    %c2_169 = arith.constant 2 : index
    %c9_170 = arith.constant 9 : index
    %c0_171 = arith.constant 0 : index
    %c0_172 = arith.constant 0 : index
    %143 = vector.load %arg6[%c2_169, %c9_170, %c0_171, %c0_172] : memref<3x18x16x3xbf16, #tpu.memory_space<vmem>>, vector<1x8x16x3xbf16>
    %144 = vector.shape_cast %143 : vector<1x8x16x3xbf16> to vector<8x16x3xbf16>
    %145 = vector.shape_cast %144 : vector<8x16x3xbf16> to vector<128x3xbf16>
    %c1_173 = arith.constant 1 : index
    %c2_174 = arith.constant 2 : index
    %c0_175 = arith.constant 0 : index
    %c0_176 = arith.constant 0 : index
    %146 = vector.load %arg3[%c1_173, %c2_174, %c0_175, %c0_176] : memref<3x3x3x64xbf16, #tpu.memory_space<vmem>>, vector<1x1x3x64xbf16>
    %147 = vector.shape_cast %146 : vector<1x1x3x64xbf16> to vector<3x64xbf16>
    %cst_177 = arith.constant dense<0.000000e+00> : vector<128x64xf32>
    %148 = tpu.matmul %145, %147, %cst_177 {dimension_numbers = #tpu.dot_dimension_numbers<[1], [0], [0], [1], [0, 0, 1, 1], [], []>} : vector<128x3xbf16>, vector<3x64xbf16>, vector<128x64xf32> -> vector<128x64xf32>
    %149 = arith.addf %142, %148 : vector<128x64xf32>
    %c0_178 = arith.constant 0 : index
    %c10 = arith.constant 10 : index
    %c0_179 = arith.constant 0 : index
    %c0_180 = arith.constant 0 : index
    %150 = vector.load %arg6[%c0_178, %c10, %c0_179, %c0_180] : memref<3x18x16x3xbf16, #tpu.memory_space<vmem>>, vector<1x8x16x3xbf16>
    %151 = vector.shape_cast %150 : vector<1x8x16x3xbf16> to vector<8x16x3xbf16>
    %152 = vector.shape_cast %151 : vector<8x16x3xbf16> to vector<128x3xbf16>
    %c2_181 = arith.constant 2 : index
    %c0_182 = arith.constant 0 : index
    %c0_183 = arith.constant 0 : index
    %c0_184 = arith.constant 0 : index
    %153 = vector.load %arg3[%c2_181, %c0_182, %c0_183, %c0_184] : memref<3x3x3x64xbf16, #tpu.memory_space<vmem>>, vector<1x1x3x64xbf16>
    %154 = vector.shape_cast %153 : vector<1x1x3x64xbf16> to vector<3x64xbf16>
    %cst_185 = arith.constant dense<0.000000e+00> : vector<128x64xf32>
    %155 = tpu.matmul %152, %154, %cst_185 {dimension_numbers = #tpu.dot_dimension_numbers<[1], [0], [0], [1], [0, 0, 1, 1], [], []>} : vector<128x3xbf16>, vector<3x64xbf16>, vector<128x64xf32> -> vector<128x64xf32>
    %156 = arith.addf %149, %155 : vector<128x64xf32>
    %c1_186 = arith.constant 1 : index
    %c10_187 = arith.constant 10 : index
    %c0_188 = arith.constant 0 : index
    %c0_189 = arith.constant 0 : index
    %157 = vector.load %arg6[%c1_186, %c10_187, %c0_188, %c0_189] : memref<3x18x16x3xbf16, #tpu.memory_space<vmem>>, vector<1x8x16x3xbf16>
    %158 = vector.shape_cast %157 : vector<1x8x16x3xbf16> to vector<8x16x3xbf16>
    %159 = vector.shape_cast %158 : vector<8x16x3xbf16> to vector<128x3xbf16>
    %c2_190 = arith.constant 2 : index
    %c1_191 = arith.constant 1 : index
    %c0_192 = arith.constant 0 : index
    %c0_193 = arith.constant 0 : index
    %160 = vector.load %arg3[%c2_190, %c1_191, %c0_192, %c0_193] : memref<3x3x3x64xbf16, #tpu.memory_space<vmem>>, vector<1x1x3x64xbf16>
    %161 = vector.shape_cast %160 : vector<1x1x3x64xbf16> to vector<3x64xbf16>
    %cst_194 = arith.constant dense<0.000000e+00> : vector<128x64xf32>
    %162 = tpu.matmul %159, %161, %cst_194 {dimension_numbers = #tpu.dot_dimension_numbers<[1], [0], [0], [1], [0, 0, 1, 1], [], []>} : vector<128x3xbf16>, vector<3x64xbf16>, vector<128x64xf32> -> vector<128x64xf32>
    %163 = arith.addf %156, %162 : vector<128x64xf32>
    %c2_195 = arith.constant 2 : index
    %c10_196 = arith.constant 10 : index
    %c0_197 = arith.constant 0 : index
    %c0_198 = arith.constant 0 : index
    %164 = vector.load %arg6[%c2_195, %c10_196, %c0_197, %c0_198] : memref<3x18x16x3xbf16, #tpu.memory_space<vmem>>, vector<1x8x16x3xbf16>
    %165 = vector.shape_cast %164 : vector<1x8x16x3xbf16> to vector<8x16x3xbf16>
    %166 = vector.shape_cast %165 : vector<8x16x3xbf16> to vector<128x3xbf16>
    %c2_199 = arith.constant 2 : index
    %c2_200 = arith.constant 2 : index
    %c0_201 = arith.constant 0 : index
    %c0_202 = arith.constant 0 : index
    %167 = vector.load %arg3[%c2_199, %c2_200, %c0_201, %c0_202] : memref<3x3x3x64xbf16, #tpu.memory_space<vmem>>, vector<1x1x3x64xbf16>
    %168 = vector.shape_cast %167 : vector<1x1x3x64xbf16> to vector<3x64xbf16>
    %cst_203 = arith.constant dense<0.000000e+00> : vector<128x64xf32>
    %169 = tpu.matmul %166, %168, %cst_203 {dimension_numbers = #tpu.dot_dimension_numbers<[1], [0], [0], [1], [0, 0, 1, 1], [], []>} : vector<128x3xbf16>, vector<3x64xbf16>, vector<128x64xf32> -> vector<128x64xf32>
    %170 = arith.addf %163, %169 : vector<128x64xf32>
    %171 = vector.broadcast %36 : vector<1x64xf32> to vector<128x64xf32>
    %172 = arith.addf %170, %171 : vector<128x64xf32>
    %173 = vector.shape_cast %172 : vector<128x64xf32> to vector<8x16x64xf32>
    %c0_204 = arith.constant 0 : index
    %c8_205 = arith.constant 8 : index
    %c0_206 = arith.constant 0 : index
    %c0_207 = arith.constant 0 : index
    %174 = vector.load %arg5[%c0_204, %c8_205, %c0_206, %c0_207] : memref<1x16x16x64xf32, #tpu.memory_space<vmem>>, vector<1x8x16x64xf32>
    %175 = vector.shape_cast %174 : vector<1x8x16x64xf32> to vector<8x16x64xf32>
    %176 = vector.shape_cast %173 : vector<8x16x64xf32> to vector<1x8x16x64xf32>
    tpu.vector_store %arg5[%c0_204, %c8_205, %c0_206, %c0_207], %176 {strides = array<i32>} : memref<1x16x16x64xf32, #tpu.memory_space<vmem>>, vector<1x8x16x64xf32>,
    return
  }
  func.func @transform_0(%arg0: i32, %arg1: i32) -> (i32, i32, i32, i32) {
    %c0_i32 = arith.constant 0 : i32
    %c0_i32_0 = arith.constant 0 : i32
    %c0_i32_1 = arith.constant 0 : i32
    %c0_i32_2 = arith.constant 0 : i32
    return %arg1, %c0_i32, %c0_i32_0, %c0_i32_1 : i32, i32, i32, i32
  }
  func.func @transform_1(%arg0: i32, %arg1: i32) -> (i32, i32, i32, i32) {
    %c0_i32 = arith.constant 0 : i32
    %c0_i32_0 = arith.constant 0 : i32
    %c0_i32_1 = arith.constant 0 : i32
    %c0_i32_2 = arith.constant 0 : i32
    return %c0_i32, %c0_i32_0, %c0_i32_1, %arg0 : i32, i32, i32, i32
  }
  func.func @transform_2(%arg0: i32, %arg1: i32) -> (i32, i32) {
    %c0_i32 = arith.constant 0 : i32
    %c0_i32_0 = arith.constant 0 : i32
    return %c0_i32, %arg0 : i32, i32
  }
  func.func @transform_3(%arg0: i32, %arg1: i32) -> (i32, i32, i32, i32) {
    %c0_i32 = arith.constant 0 : i32
    %c0_i32_0 = arith.constant 0 : i32
    %c0_i32_1 = arith.constant 0 : i32
    return %arg1, %c0_i32, %c0_i32_0, %arg0 : i32, i32, i32, i32
  }
}

</mosaic_0001>

<bundles_post_ra>
// kernel: tpu_custom_call.1
= control target key start
LH: loop header
LB: loop body
LE: loop exit
PB: predicated region body
PF: predicated region fallthrough
CT: control target
= control target key end

     0   :  { %8 = vsyncpa [#allocation4], 0  ;;  %s5517_s0 = inlined_call_operand.vmem [shape: f32[2,16,16,3], index: 0, kind: input, shape index: {}]   ;;  %s5518_s1 = inlined_call_operand.vmem [shape: bf16[3,3,3,64], index: 1, kind: input, shape index: {}]   ;;  %s5519_s2 = inlined_call_operand.vmem [shape: f32[1,64], index: 2, kind: input, shape index: {}]   ;;  %s5520_s3 = inlined_call_operand.hbm [shape: f32[2,16,16,64], index: 3, kind: output, shape index: {}]  }
   0x1   :  { %10 = vsyncpa [#allocation4 + $0x1], 0  ;;  %s4469_s12 = smov 0   ;;  %s4471_s13 = smov 0  }
   0x2   :  { %s4473_s14 = smov 0   ;;  %s4475_s15 = smov 0  }
   0x3   :  { %s4477_s16 = smov 0   ;;  %s4479_s17 = smov 0  }
   0x4 LB: > { %s3369_s18 = sadd.s32 4294967295, %s4442_s17   ;;  %s3370_s19 = sadd.s32 4294967294, %s4442_s17   ;;  %s4442_s17 = sphi %s4479_s17, %s16_s17   ;;  %s4438_s16 = sphi %s4477_s16, %s5543_s16   ;;  %s4434_s15 = sphi %s4475_s15, %s5542_s15   ;;  %s4430_s14 = sphi %s4473_s14, %s5541_s14   ;;  %s4426_s13 = sphi %s4471_s13, %s5540_s13   ;;  %s4422_s12 = sphi %s4469_s12, %s5539_s12  }
   0x5   : > { %s25_s20 = sadd.s32 1, %s4438_s16  ;;  %s115_s21 = sadd.s32 1, %s4430_s14 }
   0x6   : > { %p26_p0 = scmp.ge.s32.totalorder %s25_s20, 2  ;;  %p125_p1 = scmp.ne.s32.totalorder %s4430_s14, %s4426_s13 }
   0x7   : > { %p126_p2 = scmp.eq.s32.totalorder %s3369_s18, 1  ;;  %p131_p3 = scmp.ne.s32.totalorder %s4426_s13, %s4422_s12 }
   0x8   : > { %s5545_s20 = smov (%p26_p0, %s25_s20), 0  ;;  %p132_p5 = scmp.eq.s32.totalorder %s3370_s19, 1 }
   0x9   : > { %p4509_p4 = por %p126_p2, %p125_p1  ;;  %s110_s23 = ssub.s32 %s4438_s16, %s5545_s20 }
   0xa   : > { %p3375_p6 = scmp.ge.s32.totalorder %s4442_s17, 1  ;;  %p113_p7 = scmp.eq.s32.totalorder %s110_s23, 0 }
   0xb   : > { %p4516_p8 = por %p132_p5, %p131_p3  ;;  %p171_p9 = scmp.lt.s32.totalorder %s4442_s17, 3 }
   0xc   : > { %s4522_s25 = scalar_select %p113_p7, %s4430_s14, %s115_s21  }
   0xd   : > { %p172_p10 = pnand %p3375_p6, %p171_p9 }
   0xe   : > { %vm391_vm0 = vcmask (!%p172_p10), 1040384   ;;  %v3379_v0 = vld [vmem:[%s5518_s1 + $0x2] sm:$0x3] (!%p172_p10)  ;;  %vm585_vm1 = vcmask (!%p172_p10), 1041408   ;;  %vm477_vm2 = vcmask (!%p172_p10), 23552   ;;  %p202_p11 = scmp.lt.s32.totalorder (!%p172_p10), %s4434_s15, 1 }
   0xf   : > { %175 = sbr.rel (%p172_p10) target bundleno = 552 (0x228), region = 32  ;;  %v3460_v1 = vld [vmem:[%s5518_s1 + $0x2] sm:$0x3] (!%p172_p10)  ;;  %v4444_v2 = vmov (!%p172_p10), 65535   ;;  %v4445_v4 = vmov (!%p172_p10), 0   ;;  %vm458_vm5 = vcmask (!%p172_p10), 1047552  }
  0x10   : > { %v586_v3 = vsel (!%p172_p10), %vm391_vm0, 4294967295, %v4444_v2  ;;  %499 = vst.msk [vmem:[#allocation2 + $0x90] sm:$0xff] (!%p172_p10), %vm477_vm2, %v4445_v4  ;;  %478 = vst.msk [vmem:[#allocation2] sm:$0xff] (!%p172_p10), %vm477_vm2, %v4445_v4  ;;  %v549_v5 = vld [vmem:[%s5518_s1] sm:$0x3] (!%p172_p10)  ;;  %s199_s6 = sand.u32 (!%p172_p10), 1, %s4426_s13  }
  0x11   : > { %497 = vst.msk [vmem:[#allocation2 + $0x88] sm:$0xff] (!%p172_p10), %vm477_vm2, %v4445_v4  ;;  %518 = vst.msk [vmem:[#allocation2 + $0x118] sm:$0xff] (!%p172_p10), %vm477_vm2, %v4445_v4  ;;  %v1913_v6 = vld [vmem:[%s5518_s1] sm:$0x3] (!%p172_p10)  ;;  %vm392_vm3 = vsmask.f32 (!%p172_p10), 256 }
  0x12   : > { %520 = vst.msk [vmem:[#allocation2 + $0x120] sm:$0xff] (!%p172_p10), %vm477_vm2, %v4445_v4  ;;  %539 = vst.msk [vmem:[#allocation2 + $0x1a8] sm:$0xff] (!%p172_p10), %vm477_vm2, %v4445_v4  ;;  %v4545_v7 = vsel (!%p172_p10), %vm585_vm1, %v586_v3, 0  ;;  %v3396_v13 = vld [vmem:[%s5518_s1 + $0x4] sm:$0x3] (!%p172_p10)  ;;  %vm1887_vm8 = vcmask (!%p172_p10), 523264  }
  0x13   : > { %v589_v8 = vand.u32 (!%p172_p10), %v3379_v0, %v4545_v7  ;;  %v1949_v9 = vand.u32 (!%p172_p10), %v3460_v1, %v4545_v7  ;;  %v4553_v10 = vand.u32 (!%p172_p10), %v4545_v7, %v549_v5  ;;  %v4556_v11 = vand.u32 (!%p172_p10), %v1913_v6, %v4545_v7  ;;  %vm4559_vm4 = vmand (!%p172_p10), %vm391_vm0, %vm392_vm3  ;;  %v3477_v14 = vld [vmem:[%s5518_s1 + $0x4] sm:$0x3] (!%p172_p10)  ;;  %s5471_s23 = scalar_lea.sflag (!%p172_p10), [#allocation4], %s199_s6  ;;  %s4446_s27 = smov (!%p172_p10), [#allocation3]  }
  0x14   : > { %v4591_v27 = vand.u32 (!%p172_p10), %v3396_v13, %v4545_v7  ;;  %v4604_v34 = vand.u32 (!%p172_p10), %v3477_v14, %v4545_v7  ;;  %vm459_vm6 = vsmask.f32 (!%p172_p10), 7424  ;;  %s4368_s28 = sshll.u32 (!%p172_p10), %s4446_s27, 4  ;;  %s4369_s28 = int_to_ptr.vmem [resolvable:$false] %s4368_s28 }
  0x15   : > { %3725 = vmatprep.subr.bf16.mxu0 (!%p172_p10), %v589_v8  ;;  %3887 = vmatprep.subr.bf16.mxu1 (!%p172_p10), %v1949_v9  ;;  %vm4836_vm7 = vmand (!%p172_p10), %vm458_vm5, %vm459_vm6  ;;  %s4370_s29 = scalar_lea.vmem (!%p172_p10), %s4369_s28, 8192 }
  0x16   : > { %s203_s7 = scalar_select %p202_p11, %s4434_s15, 1  ;;  %3726 = vmatpush3.bf16.msra.mxu0 %v589_v8  ;;  %3888 = vmatpush3.bf16.msra.mxu1 %v1949_v9 }
  0x17   : > { %3743 = vmatprep.subr.bf16.mxu0 %v4553_v10  ;;  %3905 = vmatprep.subr.bf16.mxu1 %v4556_v11  ;;  %v550_v22 = vld [vmem:[#allocation2 + $0x90] sm:$0xff] }
  0x18   : > { %s3561_s8 = sshll.u32 %s203_s7, 8  ;;  %3727 = vmatprep.mubr.msk.bf16.mxu0 %vm477_vm2, %v550_v22  ;;  %s3376_s7 = sshll.u32 %s199_s6, 8 }
  0x19   : > { %s4566_s11 = scalar_lea.vmem %s5517_s0, %s3561_s8  ;;  %s5364_s10 = scalar_lea.vmem [#allocation3], %s3376_s7 }
  0x1a   : > { %v215_v15 = vld [vmem:[%s4566_s11] sm:$0xff]  ;;  %v216_v16 = vld [vmem:[%s4566_s11 + $0x8] sm:$0xff]  ;;  %v229_v17 = vld [vmem:[%s4566_s11 + $0x70] sm:$0xff]  ;;  %s3270_s18 = sshll.u32 %s5364_s10, 4  ;;  %s5458_s18 = int_to_ptr.vmem [resolvable:$true] %s3270_s18 }
  0x1b   : > { %v4577_v18 = vpack.c.bf16 %v216_v16, %v215_v15  ;;  %v230_v19 = vld [vmem:[%s4566_s11 + $0x78] sm:$0xff]  ;;  %v231_v20 = vld [vmem:[%s4566_s11 + $0x80] sm:$0xff]  ;;  %v232_v21 = vld [vmem:[%s4566_s11 + $0x88] sm:$0xff]  ;;  %s4364_s26 = scalar_lea.vmem %s5458_s18, 4096  ;;  %p4371_p1 = scmp.lt.s32.totalorder %s5458_s18, %s4369_s28 }
  0x1c   : > { %v4584_v23 = vpack.c.bf16 %v230_v19, %v229_v17  ;;  %v4586_v24 = vpack.c.bf16 %v232_v21, %v231_v20  ;;  %v217_v25 = vld [vmem:[%s4566_s11 + $0x10] sm:$0xff]  ;;  %v218_v26 = vld [vmem:[%s4566_s11 + $0x18] sm:$0xff]  ;;  %v219_v31 = vld [vmem:[%s4566_s11 + $0x20] sm:$0xff]  ;;  %p4365_p12 = scmp.ne.s32.totalorder %s5458_s18, %s4364_s26  ;;  %p4372_p2 = scmp.lt.s32.totalorder %s4370_s29, %s4364_s26 }
  0x1d   : > { %v264_v28 = vshrl.u32 %v4577_v18, 16  ;;  %v267_v29 = vshll.u32 %v4577_v18, 16  ;;  %501 = vst.msk [vmem:[#allocation2 + $0x98] sm:$0xff] %vm477_vm2, %v4577_v18  ;;  %v4598_v30 = vpack.c.bf16 %v218_v26, %v217_v25  ;;  %v220_v32 = vld [vmem:[%s4566_s11 + $0x28] sm:$0xff]  ;;  %v233_v33 = vld [vmem:[%s4566_s11 + $0x90] sm:$0xff]  ;;  %v234_v39 = vld [vmem:[%s4566_s11 + $0x98] sm:$0xff] }
  0x1e   : > { %v313_v35 = vshrl.u32 %v4584_v23, 16  ;;  %508 = vst.msk [vmem:[#allocation2 + $0xd0] sm:$0xff] %vm477_vm2, %v4584_v23  ;;  %v320_v36 = vshrl.u32 %v4586_v24, 16  ;;  %v323_v37 = vshll.u32 %v4586_v24, 16  ;;  %509 = vst.msk [vmem:[#allocation2 + $0xd8] sm:$0xff] %vm477_vm2, %v4586_v24  ;;  %v4613_v38 = vpack.c.bf16 %v220_v32, %v219_v31  ;;  %v235_v40 = vld [vmem:[%s4566_s11 + $0xa0] sm:$0xff]  ;;  %p4366_p13 = pnand %p4365_p12, %p4509_p4  ;;  %p4373_p3 = por %p4372_p2, %p4371_p1 }
  0x1f   : > { %v236_v41 = vld [vmem:[%s4566_s11 + $0xa8] sm:$0xff]  ;;  %502 = vst.msk [vmem:[#allocation2 + $0xa0] sm:$0xff] %vm477_vm2, %v4598_v30  ;;  %v4620_v42 = vpack.c.bf16 %v234_v39, %v233_v33  ;;  %v221_v44 = vld [vmem:[%s4566_s11 + $0x30] sm:$0xff]  ;;  %v222_v45 = vld [vmem:[%s4566_s11 + $0x38] sm:$0xff]  ;;  %v266_v47 = vrot.slane %v264_v28, 7  ;;  %v316_v48 = vshll.u32 %v4584_v23, 16 }
  0x20   : > { %v4622_v43 = vpack.c.bf16 %v236_v41, %v235_v40  ;;  %v223_v46 = vld [vmem:[%s4566_s11 + $0x40] sm:$0xff]  ;;  %503 = vst.msk [vmem:[#allocation2 + $0xa8] sm:$0xff] %vm477_vm2, %v4613_v38  ;;  %v4632_v49 = vpack.c.bf16 %v222_v45, %v221_v44  ;;  %v224_v50 = vld [vmem:[%s4566_s11 + $0x48] sm:$0xff]  ;;  %v237_v51 = vld [vmem:[%s4566_s11 + $0xb0] sm:$0xff]  ;;  %v315_v53 = vrot.slane %v313_v35, 7  ;;  %v322_v54 = vrot.slane %v320_v36, 7  ;;  %p4367_p0 = pneg %p4366_p13 }
  0x21   : > { %v238_v52 = vld [vmem:[%s4566_s11 + $0xb8] sm:$0xff]  ;;  %v271_v55 = vshrl.u32 %v4598_v30, 16  ;;  %510 = vst.msk [vmem:[#allocation2 + $0xe0] sm:$0xff] %vm477_vm2, %v4620_v42  ;;  %v4646_v56 = vpack.c.bf16 %v224_v50, %v223_v46  ;;  %v239_v58 = vld [vmem:[%s4566_s11 + $0xc0] sm:$0xff]  ;;  %v240_v59 = vld [vmem:[%s4566_s11 + $0xc8] sm:$0xff]  ;;  %v269_v61 = vor.u32 %v267_v29, %v266_v47  ;;  %v274_v62 = vshll.u32 %v4598_v30, 16 }
  0x22   : > { %511 = vst.msk [vmem:[#allocation2 + $0xe8] sm:$0xff] %vm477_vm2, %v4622_v43  ;;  %v4648_v57 = vpack.c.bf16 %v238_v52, %v237_v51  ;;  %v225_v60 = vld [vmem:[%s4566_s11 + $0x50] sm:$0xff]  ;;  %504 = vst.msk [vmem:[#allocation2 + $0xb0] sm:$0xff] %vm477_vm2, %v4632_v49  ;;  %v4658_v63 = vpack.c.bf16 %v240_v59, %v239_v58  ;;  %v226_v0 = vld [vmem:[%s4566_s11 + $0x58] sm:$0xff]  ;;  %v318_v3 = vor.u32 %v316_v48, %v315_v53  ;;  %v278_v16 = vshrl.u32 %v4613_v38, 16  ;;  %p4374_p5 = pnand %p4373_p3, %p4367_p0 }
  0x23   : > { %v227_v1 = vld [vmem:[%s4566_s11 + $0x60] sm:$0xff]  ;;  %v228_v2 = vld [vmem:[%s4566_s11 + $0x68] sm:$0xff]  ;;  %v325_v4 = vor.u32 %v323_v37, %v322_v54  ;;  %v273_v5 = vrot.slane %v271_v55, 7  ;;  %505 = vst.msk [vmem:[#allocation2 + $0xb8] sm:$0xff] %vm477_vm2, %v4646_v56  ;;  %v4673_v6 = vpack.c.bf16 %v226_v0, %v225_v60  ;;  %v241_v9 = vld [vmem:[%s4566_s11 + $0xd0] sm:$0xff]  ;;  %v394_v15 = vsel %vm4559_vm4, 0, %v269_v61 }
  0x24   : > { %512 = vst.msk [vmem:[#allocation2 + $0xf0] sm:$0xff] %vm477_vm2, %v4648_v57  ;;  %v4675_v8 = vpack.c.bf16 %v228_v2, %v227_v1  ;;  %v242_v13 = vld [vmem:[%s4566_s11 + $0xd8] sm:$0xff]  ;;  %v243_v14 = vld [vmem:[%s4566_s11 + $0xe0] sm:$0xff]  ;;  %513 = vst.msk [vmem:[#allocation2 + $0xf8] sm:$0xff] %vm477_vm2, %v4658_v63  ;;  %v401_v21 = vsel %vm4559_vm4, 0, %v318_v3  ;;  %v280_v33 = vrot.slane %v278_v16, 7 }
  0x25   : > { %v4683_v17 = vld [vmem:[#allocation2 + $0x98] sm:$0xff]  ;;  %v4687_v19 = vpack.c.bf16 %v242_v13, %v241_v9  ;;  %v244_v20 = vld [vmem:[%s4566_s11 + $0xe8] sm:$0xff]  ;;  %480 = vst.msk [vmem:[#allocation2 + $0x8] sm:$0xff] %vm477_vm2, %v394_v15  ;;  %v402_v22 = vsel %vm4559_vm4, 0, %v325_v4  ;;  %v276_v25 = vor.u32 %v274_v62, %v273_v5  ;;  %v4699_v26 = vld [vmem:[#allocation2 + $0xd0] sm:$0xff]  ;;  %v281_v39 = vshll.u32 %v4613_v38, 16 }
  0x26   : > { %3728 = vmatmul.mubr.msk.bf16.vlgmr.msra.gmra.mrb[0].mxu0 %vm477_vm2, %v4683_v17  ;;  %v4701_v31 = vld [vmem:[#allocation2 + $0xd8] sm:$0xff]  ;;  %506 = vst.msk [vmem:[#allocation2 + $0xc0] sm:$0xff] %vm477_vm2, %v4673_v6  ;;  %507 = vst.msk [vmem:[#allocation2 + $0xc8] sm:$0xff] %vm477_vm2, %v4675_v8  ;;  %v4707_v32 = vpack.c.bf16 %v244_v20, %v243_v14  ;;  %v327_v40 = vshrl.u32 %v4620_v42, 16  ;;  %3889 = vmatprep.mubr.msk.bf16.mxu1 %vm477_vm2, %v4699_v26  ;;  %v4718_v41 = vld [vmem:[#allocation2 + $0xa0] sm:$0xff]  ;;  %v330_v45 = vshll.u32 %v4620_v42, 16 }
  0x27   : > { %487 = vst.msk [vmem:[#allocation2 + $0x40] sm:$0xff] %vm477_vm2, %v401_v21  ;;  %488 = vst.msk [vmem:[#allocation2 + $0x48] sm:$0xff] %vm477_vm2, %v402_v22  ;;  %3744 = vmatpush3.bf16.msra.mxu0 %v4553_v10  ;;  %v395_v44 = vsel %vm4559_vm4, 0, %v276_v25  ;;  %v334_v46 = vshrl.u32 %v4622_v43, 16  ;;  %v337_v47 = vshll.u32 %v4622_v43, 16  ;;  %3890 = vmatmul.mubr.msk.bf16.vlgmr.msra.gmra.mrb[0].mxu1 %vm477_vm2, %v4701_v31  ;;  %v283_v10 = vor.u32 %v281_v39, %v280_v33  ;;  %v4759_v2 = vld [vmem:[#allocation2 + $0xa8] sm:$0xff] }
  0x28   : > { %514 = vst.msk [vmem:[#allocation2 + $0x100] sm:$0xff] %vm477_vm2, %v4687_v19  ;;  %3731 = vmatprep.mubr.msk.bf16.mxu0 %vm477_vm2, %v4718_v41  ;;  %515 = vst.msk [vmem:[#allocation2 + $0x108] sm:$0xff] %vm477_vm2, %v4707_v32  ;;  %v329_v50 = vrot.slane %v327_v40, 7  ;;  %v285_v51 = vshrl.u32 %v4632_v49, 16  ;;  %v288_v52 = vshll.u32 %v4632_v49, 16  ;;  %3906 = vmatpush3.bf16.msra.mxu1 %v4556_v11  ;;  %v4741_v53 = vld [vmem:[#allocation2 + $0xe0] sm:$0xff] }
  0x29   : > { %481 = vst.msk [vmem:[#allocation2 + $0x10] sm:$0xff] %vm477_vm2, %v395_v44  ;;  %3761 = vmatprep.subr.bf16.mxu0 %v4591_v27  ;;  %v336_v54 = vrot.slane %v334_v46, 7  ;;  %v292_v58 = vshrl.u32 %v4646_v56, 16  ;;  %v295_v59 = vshll.u32 %v4646_v56, 16  ;;  %v5525_v60 = vshrl.u32 %v4648_v57, 16  ;;  %3893 = vmatprep.mubr.msk.bf16.mxu1 %vm477_vm2, %v4741_v53  ;;  %v4769_v13 = vld [vmem:[#allocation2 + $0xb0] sm:$0xff] }
  0x2a   : > { %3923 = vmatprep.subr.bf16.mxu1 %v4604_v34  ;;  %v396_v11 = vsel %vm4559_vm4, 0, %v283_v10  ;;  %v332_v61 = vor.u32 %v330_v45, %v329_v50  ;;  %v287_v0 = vrot.slane %v285_v51, 7  ;;  %v344_v1 = vshll.u32 %v4648_v57, 16  ;;  %v4777_v22 = vld [vmem:[#allocation2 + $0xe8] sm:$0xff] }
  0x2b   : > { %482 = vst.msk [vmem:[#allocation2 + $0x18] sm:$0xff] %vm477_vm2, %v396_v11  ;;  %v339_v3 = vor.u32 %v337_v47, %v336_v54  ;;  %v294_v4 = vrot.slane %v292_v58, 7  ;;  %v343_v5 = vrot.slane %v5525_v60, 7  ;;  %v5523_v9 = vshrl.u32 %v4658_v63, 16  ;;  %v4790_v50 = vld [vmem:[#allocation2 + $0xf0] sm:$0xff] }
  0x2c   : > { %v403_v14 = vsel %vm4559_vm4, 0, %v332_v61  ;;  %v290_v15 = vor.u32 %v288_v52, %v287_v0  ;;  %v351_v20 = vshll.u32 %v4658_v63, 16  ;;  %v5522_v21 = vshrl.u32 %v4673_v6, 16 }
  0x2d   : > { %489 = vst.msk [vmem:[#allocation2 + $0x50] sm:$0xff] %vm477_vm2, %v403_v14  ;;  %v404_v25 = vsel %vm4559_vm4, 0, %v339_v3  ;;  %v297_v33 = vor.u32 %v295_v59, %v294_v4  ;;  %v346_v44 = vor.u32 %v344_v1, %v343_v5  ;;  %v350_v10 = vrot.slane %v5523_v9, 7  ;;  %v4842_v9 = vld [vmem:[#allocation2 + $0xb8] sm:$0xff]  ;;  %v4853_v60 = vld [vmem:[#allocation2 + $0xc0] sm:$0xff] }
  0x2e   : > { %3732 = vmatmul.mubr.msk.bf16.gmra.mrb[4].mxu0 %vm477_vm2, %v4759_v2  ;;  %490 = vst.msk [vmem:[#allocation2 + $0x58] sm:$0xff] %vm477_vm2, %v404_v25  ;;  %v397_v54 = vsel %vm4559_vm4, 0, %v290_v15  ;;  %v301_v11 = vrot.slane %v5522_v21, 7  ;;  %v302_v61 = vshll.u32 %v4673_v6, 16  ;;  %v5521_v0 = vshrl.u32 %v4675_v8, 16 }
  0x2f   : > { %3735 = vmatprep.mubr.msk.bf16.mxu0 %vm477_vm2, %v4769_v13  ;;  %483 = vst.msk [vmem:[#allocation2 + $0x20] sm:$0xff] %vm477_vm2, %v397_v54  ;;  %v398_v3 = vsel %vm4559_vm4, 0, %v297_v33  ;;  %v405_v4 = vsel %vm4559_vm4, 0, %v346_v44  ;;  %v353_v5 = vor.u32 %v351_v20, %v350_v10  ;;  %v309_v14 = vshll.u32 %v4675_v8, 16  ;;  %3894 = vmatmul.mubr.msk.bf16.gmra.mrb[4].mxu1 %vm477_vm2, %v4777_v22 }
  0x30   : > { %484 = vst.msk [vmem:[#allocation2 + $0x28] sm:$0xff] %vm477_vm2, %v398_v3  ;;  %491 = vst.msk [vmem:[#allocation2 + $0x60] sm:$0xff] %vm477_vm2, %v405_v4  ;;  %v304_v15 = vor.u32 %v302_v61, %v301_v11  ;;  %v308_v25 = vrot.slane %v5521_v0, 7  ;;  %v5524_v33 = vshrl.u32 %v4687_v19, 16  ;;  %v358_v44 = vshll.u32 %v4687_v19, 16  ;;  %3897 = vmatprep.mubr.msk.bf16.mxu1 %vm477_vm2, %v4790_v50 }
  0x31   : > { %v406_v10 = vsel %vm4559_vm4, 0, %v353_v5  ;;  %v5526_v54 = vshrl.u32 %v4707_v32, 16  ;;  %v365_v3 = vshll.u32 %v4707_v32, 16  ;;  %v410_v11 = vrot.slane %v267_v29, 1  ;;  %v3414_v5 = vld [vmem:[%s5518_s1 + $0x8] sm:$0x3] }
  0x32   : > { %492 = vst.msk [vmem:[#allocation2 + $0x68] sm:$0xff] %vm477_vm2, %v406_v10  ;;  %v399_v4 = vsel %vm4559_vm4, 0, %v304_v15  ;;  %v311_v0 = vor.u32 %v309_v14, %v308_v25  ;;  %v357_v21 = vrot.slane %v5524_v33, 7  ;;  %v424_v29 = vrot.slane %v316_v48, 1 }
  0x33   : > { %485 = vst.msk [vmem:[#allocation2 + $0x30] sm:$0xff] %vm477_vm2, %v399_v4  ;;  %v364_v15 = vrot.slane %v5526_v54, 7  ;;  %v411_v25 = vor.u32 %v410_v11, %v264_v28  ;;  %v426_v10 = vrot.slane %v323_v37, 1  ;;  %v412_v33 = vrot.slane %v274_v62, 1  ;;  %v4863_v28 = vld [vmem:[#allocation2 + $0xf8] sm:$0xff] }
  0x34   : > { %v400_v48 = vsel %vm4559_vm4, 0, %v311_v0  ;;  %v360_v4 = vor.u32 %v358_v44, %v357_v21  ;;  %v425_v54 = vor.u32 %v424_v29, %v313_v35  ;;  %v414_v18 = vrot.slane %v281_v39, 1  ;;  %v4876_v35 = vld [vmem:[#allocation2 + $0x100] sm:$0xff] }
  0x35   : > { %486 = vst.msk [vmem:[#allocation2 + $0x38] sm:$0xff] %vm477_vm2, %v400_v48  ;;  %v367_v37 = vor.u32 %v365_v3, %v364_v15  ;;  %v461_v62 = vsel %vm4836_vm7, %v411_v25, 0  ;;  %v427_v0 = vor.u32 %v426_v10, %v320_v36  ;;  %v413_v23 = vor.u32 %v412_v33, %v271_v55  ;;  %v4931_v15 = vld [vmem:[#allocation2 + $0xc8] sm:$0xff]  ;;  %v246_v10 = vld [vmem:[%s4566_s11 + $0xf8] sm:$0xff]  ;;  %v541_v48 = vld [vmem:[#allocation2] sm:$0xff] }
  0x36   : > { %3736 = vmatmul.mubr.msk.bf16.gmra.mrb[8].mxu0 %vm477_vm2, %v4842_v9  ;;  %v407_v39 = vsel %vm4559_vm4, 0, %v360_v4  ;;  %522 = vst.msk [vmem:[#allocation2 + $0x128] sm:$0xff] %vm477_vm2, %v461_v62  ;;  %v468_v21 = vsel %vm4836_vm7, %v425_v54, 0  ;;  %v415_v24 = vor.u32 %v414_v18, %v278_v16  ;;  %v428_v30 = vrot.slane %v330_v45, 1  ;;  %v5022_v12 = vld [vmem:[#allocation2 + $0x20] sm:$0xff] }
  0x37   : > { %3739 = vmatprep.mubr.msk.bf16.mxu0 %vm477_vm2, %v4853_v60  ;;  %493 = vst.msk [vmem:[#allocation2 + $0x70] sm:$0xff] %vm477_vm2, %v407_v39  ;;  %v408_v36 = vsel %vm4559_vm4, 0, %v367_v37  ;;  %529 = vst.msk [vmem:[#allocation2 + $0x160] sm:$0xff] %vm477_vm2, %v468_v21  ;;  %v469_v55 = vsel %vm4836_vm7, %v427_v0, 0  ;;  %v462_v38 = vsel %vm4836_vm7, %v413_v23, 0  ;;  %v430_v16 = vrot.slane %v337_v47, 1  ;;  %3898 = vmatmul.mubr.msk.bf16.gmra.mrb[8].mxu1 %vm477_vm2, %v4863_v28 }
  0x38   : > { %494 = vst.msk [vmem:[#allocation2 + $0x78] sm:$0xff] %vm477_vm2, %v408_v36  ;;  %530 = vst.msk [vmem:[#allocation2 + $0x168] sm:$0xff] %vm477_vm2, %v469_v55  ;;  %v463_v45 = vsel %vm4836_vm7, %v415_v24, 0  ;;  %v429_v33 = vor.u32 %v428_v30, %v327_v40  ;;  %v416_v54 = vrot.slane %v288_v52, 1  ;;  %v418_v47 = vrot.slane %v295_v59, 1  ;;  %3901 = vmatprep.mubr.msk.bf16.mxu1 %vm477_vm2, %v4876_v35  ;;  %v4953_v37 = vld [vmem:[#allocation2 + $0x108] sm:$0xff] }
  0x39   : > { %523 = vst.msk [vmem:[#allocation2 + $0x130] sm:$0xff] %vm477_vm2, %v462_v38  ;;  %524 = vst.msk [vmem:[#allocation2 + $0x138] sm:$0xff] %vm477_vm2, %v463_v45  ;;  %v431_v11 = vor.u32 %v430_v16, %v334_v46  ;;  %v432_v42 = vrot.slane %v344_v1, 1  ;;  %v434_v40 = vrot.slane %v351_v20, 1  ;;  %v420_v52 = vrot.slane %v302_v61, 1  ;;  %v4994_v45 = vld [vmem:[#allocation2 + $0x8] sm:$0xff] }
  0x3a   : > { %v470_v59 = vsel %vm4836_vm7, %v429_v33, 0  ;;  %v417_v29 = vor.u32 %v416_v54, %v285_v51  ;;  %v419_v43 = vor.u32 %v418_v47, %v292_v58  ;;  %v422_v46 = vrot.slane %v309_v14, 1  ;;  %v245_v58 = vld [vmem:[%s4566_s11 + $0xf0] sm:$0xff]  ;;  %v3486_v33 = vld [vmem:[%s5518_s1 + $0x6] sm:$0x3]  ;;  %s3562_s11 = sshll.u32 %s4434_s15, 12 }
  0x3b   : > { %531 = vst.msk [vmem:[#allocation2 + $0x170] sm:$0xff] %vm477_vm2, %v470_v59  ;;  %v471_v1 = vsel %vm4836_vm7, %v431_v11, 0  ;;  %v5533_v20 = vshrl.u32 %v4648_v57, 16  ;;  %v5534_v25 = vshrl.u32 %v4658_v63, 16  ;;  %v5535_v51 = vshrl.u32 %v4673_v6, 16  ;;  %v4999_v54 = vld [vmem:[#allocation2 + $0x10] sm:$0xff]  ;;  %s5456_s21 = scalar_lea.hbm %s5520_s3, %s3562_s11 }
  0x3c   : > { %532 = vst.msk [vmem:[#allocation2 + $0x178] sm:$0xff] %vm477_vm2, %v471_v1  ;;  %v464_v14 = vsel %vm4836_vm7, %v417_v29, 0  ;;  %v465_v4 = vsel %vm4836_vm7, %v419_v43, 0  ;;  %v5536_v57 = vshrl.u32 %v4675_v8, 16  ;;  %v436_v63 = vrot.slane %v358_v44, 1  ;;  %v4967_v44 = vld [vmem:[#allocation2 + $0x40] sm:$0xff] }
  0x3d   : > { %v433_v61 = vor.u32 %v432_v42, %v5533_v20  ;;  %v435_v49 = vor.u32 %v434_v40, %v5534_v25  ;;  %v421_v56 = vor.u32 %v420_v52, %v5535_v51  ;;  %525 = vst.msk [vmem:[#allocation2 + $0x140] sm:$0xff] %vm477_vm2, %v464_v14  ;;  %526 = vst.msk [vmem:[#allocation2 + $0x148] sm:$0xff] %vm477_vm2, %v465_v4  ;;  %v438_v8 = vrot.slane %v365_v3, 1  ;;  %v5002_v42 = vld [vmem:[#allocation2 + $0x48] sm:$0xff]  ;;  %v5006_v40 = vld [vmem:[#allocation2 + $0x50] sm:$0xff] }
  0x3e   : > { %v423_v18 = vor.u32 %v422_v46, %v5536_v57  ;;  %3740 = vmatmul.mubr.msk.bf16.gmra.mrb[12].mxu0 %vm477_vm2, %v4931_v15  ;;  %v5537_v39 = vshrl.u32 %v4687_v19, 16  ;;  %v262_v24 = vpack.c.bf16 %v246_v10, %v245_v58  ;;  %v5538_v3 = vshrl.u32 %v4707_v32, 16  ;;  %v3405_v19 = vld [vmem:[%s5518_s1 + $0x6] sm:$0x3]  ;;  %v5020_v29 = vld [vmem:[#allocation2 + $0x18] sm:$0xff]  ;;  %v5038_v1 = vld [vmem:[#allocation2 + $0x30] sm:$0xff] }
  0x3f   : > { %v472_v6 = vsel %vm4836_vm7, %v433_v61, 0  ;;  %v473_v62 = vsel %vm4836_vm7, %v435_v49, 0  ;;  %v466_v0 = vsel %vm4836_vm7, %v421_v56, 0  ;;  %3745 = vmatprep.mubr.msk.bf16.mxu0 %vm477_vm2, %v541_v48  ;;  %3902 = vmatmul.mubr.msk.bf16.gmra.mrb[12].mxu1 %vm477_vm2, %v4953_v37  ;;  %v997_v47 = vand.u32 %v3405_v19, %v4545_v7  ;;  %v5028_v43 = vld [vmem:[#allocation2 + $0x60] sm:$0xff]  ;;  %v5040_v20 = vld [vmem:[#allocation2 + $0x68] sm:$0xff]  ;;  %v5044_v25 = vld [vmem:[#allocation2 + $0x70] sm:$0xff] }
  0x40   : > { %533 = vst.msk [vmem:[#allocation2 + $0x180] sm:$0xff] %vm477_vm2, %v472_v6  ;;  %534 = vst.msk [vmem:[#allocation2 + $0x188] sm:$0xff] %vm477_vm2, %v473_v62  ;;  %v467_v23 = vsel %vm4836_vm7, %v423_v18, 0  ;;  %v437_v21 = vor.u32 %v436_v63, %v5537_v39  ;;  %v439_v30 = vor.u32 %v438_v8, %v5538_v3  ;;  %v369_v55 = vshrl.u32 %v262_v24, 16  ;;  %3907 = vmatprep.mubr.msk.bf16.mxu1 %vm477_vm2, %v4967_v44  ;;  %v5055_v51 = vld [vmem:[#allocation2 + $0x38] sm:$0xff]  ;;  %v812_v56 = vld [vmem:[#allocation2 + $0x120] sm:$0xff] }
  0x41   : > { %527 = vst.msk [vmem:[#allocation2 + $0x150] sm:$0xff] %vm477_vm2, %v466_v0  ;;  %528 = vst.msk [vmem:[#allocation2 + $0x158] sm:$0xff] %vm477_vm2, %v467_v23  ;;  %v372_v38 = vshll.u32 %v262_v24, 16  ;;  %v2357_v52 = vand.u32 %v3486_v33, %v4545_v7  ;;  %v5057_v58 = vld [vmem:[#allocation2 + $0x78] sm:$0xff]  ;;  %v5061_v10 = vld [vmem:[#allocation2 + $0x160] sm:$0xff]  ;;  %v1147_v57 = vand.u32 %v3414_v5, %v4545_v7 }
  0x42   : > { %v474_v36 = vsel %vm4836_vm7, %v437_v21, 0  ;;  %516 = vst.msk [vmem:[#allocation2 + $0x110] sm:$0xff] %vm477_vm2, %v262_v24  ;;  %v475_v32 = vsel %vm4836_vm7, %v439_v30, 0  ;;  %v371_v16 = vrot.slane %v369_v55, 7  ;;  %v5071_v48 = vld [vmem:[#allocation2 + $0x128] sm:$0xff]  ;;  %v5076_v4 = vld [vmem:[#allocation2 + $0x130] sm:$0xff] }
  0x43   : > { %535 = vst.msk [vmem:[#allocation2 + $0x190] sm:$0xff] %vm477_vm2, %v474_v36  ;;  %536 = vst.msk [vmem:[#allocation2 + $0x198] sm:$0xff] %vm477_vm2, %v475_v32  ;;  %v440_v46 = vrot.slane %v372_v38, 1  ;;  %v3495_v14 = vld [vmem:[%s5518_s1 + $0x8] sm:$0x3]  ;;  %v5083_v63 = vld [vmem:[#allocation2 + $0x170] sm:$0xff] }
  0x44   : > { %v374_v11 = vor.u32 %v372_v38, %v371_v16  ;;  %v5079_v18 = vld [vmem:[#allocation2 + $0x168] sm:$0xff]  ;;  %v2507_v6 = vand.u32 %v3495_v14, %v4545_v7  ;;  %v5092_v62 = vld [vmem:[#allocation2 + $0x138] sm:$0xff]  ;;  %v5094_v0 = vld [vmem:[#allocation2 + $0x140] sm:$0xff] }
  0x45   : > { %v441_v61 = vor.u32 %v440_v46, %v369_v55  ;;  %v5096_v8 = vld [vmem:[#allocation2 + $0x178] sm:$0xff]  ;;  %v5108_v39 = vld [vmem:[#allocation2 + $0x148] sm:$0xff] }
  0x46   : > { %3746 = vmatmul.mubr.msk.bf16.vlgmr.msra.gmra.mrb[0].mxu0 %vm477_vm2, %v4994_v45  ;;  %v409_v59 = vsel %vm4559_vm4, 0, %v374_v11  ;;  %v3423_v55 = vld [vmem:[%s5518_s1 + $0xa] sm:$0x3]  ;;  %v3513_v33 = vld [vmem:[%s5518_s1 + $0xc] sm:$0x3] }
  0x47   : > { %3762 = vmatpush3.bf16.msra.mxu0 %v4591_v27  ;;  %3749 = vmatprep.mubr.msk.bf16.mxu0 %vm477_vm2, %v4999_v54  ;;  %495 = vst.msk [vmem:[#allocation2 + $0x80] sm:$0xff] %vm477_vm2, %v409_v59  ;;  %v5024_v27 = vld [vmem:[#allocation2 + $0x58] sm:$0xff]  ;;  %v476_v49 = vsel %vm4836_vm7, %v441_v61, 0  ;;  %v5100_v23 = vld [vmem:[#allocation2 + $0x180] sm:$0xff]  ;;  %v5112_v24 = vld [vmem:[#allocation2 + $0x188] sm:$0xff]  ;;  %v1297_v19 = vand.u32 %v3423_v55, %v4545_v7 }
  0x48   : > { %3908 = vmatmul.mubr.msk.bf16.vlgmr.msra.gmra.mrb[0].mxu1 %vm477_vm2, %v5002_v42  ;;  %3779 = vmatprep.subr.bf16.mxu0 %v997_v47  ;;  %537 = vst.msk [vmem:[#allocation2 + $0x1a0] sm:$0xff] %vm477_vm2, %v476_v49  ;;  %v5110_v21 = vld [vmem:[#allocation2 + $0x150] sm:$0xff]  ;;  %v5124_v30 = vld [vmem:[#allocation2 + $0x158] sm:$0xff]  ;;  %v3504_v38 = vld [vmem:[%s5518_s1 + $0xa] sm:$0x3] }
  0x49   : > { %3924 = vmatpush3.bf16.msra.mxu1 %v4604_v34  ;;  %3911 = vmatprep.mubr.msk.bf16.mxu1 %vm477_vm2, %v5006_v40  ;;  %v5036_v34 = vld [vmem:[#allocation2 + $0x28] sm:$0xff]  ;;  %v2657_v32 = vand.u32 %v3504_v38, %v4545_v7  ;;  %v5210_v11 = vld [vmem:[#allocation2 + $0x110] sm:$0xff] }
  0x4a   : > { %3941 = vmatprep.subr.bf16.mxu1 %v2357_v52  ;;  %v5116_v3 = vld [vmem:[#allocation2 + $0x190] sm:$0xff]  ;;  %v5126_v36 = vld [vmem:[#allocation2 + $0x198] sm:$0xff]  ;;  %v3522_v59 = vld [vmem:[%s5518_s1 + $0xe] sm:$0x3] }
  0x4b   : > { %v3450_v49 = vld [vmem:[%s5518_s1 + $0x10] sm:$0x3] }
  0x4c   : > { %v1750_v5 = vand.u32 %v3450_v49, %v4545_v7 }
  0x4e   : > { %3750 = vmatmul.mubr.msk.bf16.gmra.mrb[4].mxu0 %vm477_vm2, %v5020_v29  ;;  %v5168_v16 = vld [vmem:[#allocation2 + $0x80] sm:$0xff] }
  0x4f   : > { %3753 = vmatprep.mubr.msk.bf16.mxu0 %vm477_vm2, %v5022_v12  ;;  %v2630_v61 = vld [vmem:[#allocation2 + $0x1a0] sm:$0xff] }
  0x50   : > { %3912 = vmatmul.mubr.msk.bf16.gmra.mrb[4].mxu1 %vm477_vm2, %v5024_v27 }
  0x51   : > { %3915 = vmatprep.mubr.msk.bf16.mxu1 %vm477_vm2, %v5028_v43 }
  0x56   : > { %3754 = vmatmul.mubr.msk.bf16.gmra.mrb[8].mxu0 %vm477_vm2, %v5036_v34 }
  0x57   : > { %3757 = vmatprep.mubr.msk.bf16.mxu0 %vm477_vm2, %v5038_v1 }
  0x58   : > { %3916 = vmatmul.mubr.msk.bf16.gmra.mrb[8].mxu1 %vm477_vm2, %v5040_v20 }
  0x59   : > { %3919 = vmatprep.mubr.msk.bf16.mxu1 %vm477_vm2, %v5044_v25 }
  0x5e   : > { %3758 = vmatmul.mubr.msk.bf16.gmra.mrb[12].mxu0 %vm477_vm2, %v5055_v51 }
  0x5f   : > { %3763 = vmatprep.mubr.msk.bf16.mxu0 %vm477_vm2, %v812_v56  ;;  %v3531_v56 = vld [vmem:[%s5518_s1 + $0x10] sm:$0x3] }
  0x60   : > { %3920 = vmatmul.mubr.msk.bf16.gmra.mrb[12].mxu1 %vm477_vm2, %v5057_v58 }
  0x61   : > { %3925 = vmatprep.mubr.msk.bf16.mxu1 %vm477_vm2, %v5061_v10 }
  0x66   : > { %3764 = vmatmul.mubr.msk.bf16.vlgmr.msra.gmra.mrb[0].mxu0 %vm477_vm2, %v5071_v48 }
  0x67   : > { %3780 = vmatpush3.bf16.msra.mxu0 %v997_v47  ;;  %3767 = vmatprep.mubr.msk.bf16.mxu0 %vm477_vm2, %v5076_v4 }
  0x68   : > { %3926 = vmatmul.mubr.msk.bf16.vlgmr.msra.gmra.mrb[0].mxu1 %vm477_vm2, %v5079_v18  ;;  %3797 = vmatprep.subr.bf16.mxu0 %v1147_v57 }
  0x69   : > { %3942 = vmatpush3.bf16.msra.mxu1 %v2357_v52  ;;  %3929 = vmatprep.mubr.msk.bf16.mxu1 %vm477_vm2, %v5083_v63  ;;  %v3441_v52 = vld [vmem:[%s5518_s1 + $0xe] sm:$0x3] }
  0x6a   : > { %3959 = vmatprep.subr.bf16.mxu1 %v2507_v6  ;;  %v1599_v46 = vand.u32 %v3441_v52, %v4545_v7 }
  0x6e   : > { %3768 = vmatmul.mubr.msk.bf16.gmra.mrb[4].mxu0 %vm477_vm2, %v5092_v62 }
  0x6f   : > { %3771 = vmatprep.mubr.msk.bf16.mxu0 %vm477_vm2, %v5094_v0 }
  0x70   : > { %3930 = vmatmul.mubr.msk.bf16.gmra.mrb[4].mxu1 %vm477_vm2, %v5096_v8 }
  0x71   : > { %3933 = vmatprep.mubr.msk.bf16.mxu1 %vm477_vm2, %v5100_v23 }
  0x76   : > { %3772 = vmatmul.mubr.msk.bf16.gmra.mrb[8].mxu0 %vm477_vm2, %v5108_v39 }
  0x77   : > { %3775 = vmatprep.mubr.msk.bf16.mxu0 %vm477_vm2, %v5110_v21 }
  0x78   : > { %3934 = vmatmul.mubr.msk.bf16.gmra.mrb[8].mxu1 %vm477_vm2, %v5112_v24 }
  0x79   : > { %3937 = vmatprep.mubr.msk.bf16.mxu1 %vm477_vm2, %v5116_v3 }
  0x7e   : > { %3776 = vmatmul.mubr.msk.bf16.gmra.mrb[12].mxu0 %vm477_vm2, %v5124_v30 }
  0x7f   : > { %3781 = vmatprep.mubr.msk.bf16.mxu0 %vm477_vm2, %v4994_v45  ;;  %v3432_v45 = vld [vmem:[%s5518_s1 + $0xc] sm:$0x3] }
  0x80   : > { %3938 = vmatmul.mubr.msk.bf16.gmra.mrb[12].mxu1 %vm477_vm2, %v5126_v36  ;;  %v1448_v47 = vand.u32 %v3432_v45, %v4545_v7 }
  0x81   : > { %3943 = vmatprep.mubr.msk.bf16.mxu1 %vm477_vm2, %v5002_v42 }
  0x86   : > { %3782 = vmatmul.mubr.msk.bf16.vlgmr.msra.gmra.mrb[0].mxu0 %vm477_vm2, %v4999_v54 }
  0x87   : > { %3798 = vmatpush3.bf16.msra.mxu0 %v1147_v57  ;;  %3785 = vmatprep.mubr.msk.bf16.mxu0 %vm477_vm2, %v5020_v29 }
  0x88   : > { %3944 = vmatmul.mubr.msk.bf16.vlgmr.msra.gmra.mrb[0].mxu1 %vm477_vm2, %v5006_v40  ;;  %3815 = vmatprep.subr.bf16.mxu0 %v1297_v19 }
  0x89   : > { %3960 = vmatpush3.bf16.msra.mxu1 %v2507_v6  ;;  %3947 = vmatprep.mubr.msk.bf16.mxu1 %vm477_vm2, %v5024_v27 }
  0x8a   : > { %3977 = vmatprep.subr.bf16.mxu1 %v2657_v32 }
  0x8e   : > { %3786 = vmatmul.mubr.msk.bf16.gmra.mrb[4].mxu0 %vm477_vm2, %v5022_v12 }
  0x8f   : > { %3789 = vmatprep.mubr.msk.bf16.mxu0 %vm477_vm2, %v5036_v34 }
  0x90   : > { %3948 = vmatmul.mubr.msk.bf16.gmra.mrb[4].mxu1 %vm477_vm2, %v5028_v43 }
  0x91   : > { %3951 = vmatprep.mubr.msk.bf16.mxu1 %vm477_vm2, %v5040_v20 }
  0x96   : > { %3790 = vmatmul.mubr.msk.bf16.gmra.mrb[8].mxu0 %vm477_vm2, %v5038_v1 }
  0x97   : > { %3793 = vmatprep.mubr.msk.bf16.mxu0 %vm477_vm2, %v5055_v51 }
  0x98   : > { %3952 = vmatmul.mubr.msk.bf16.gmra.mrb[8].mxu1 %vm477_vm2, %v5044_v25 }
  0x99   : > { %3955 = vmatprep.mubr.msk.bf16.mxu1 %vm477_vm2, %v5057_v58 }
  0x9e   : > { %3794 = vmatmul.mubr.msk.bf16.gmra.mrb[12].mxu0 %vm477_vm2, %v4967_v44 }
  0x9f   : > { %3799 = vmatprep.mubr.msk.bf16.mxu0 %vm477_vm2, %v4683_v17  ;;  %v2807_v17 = vand.u32 %v3513_v33, %v4545_v7 }
  0xa0   : > { %3956 = vmatmul.mubr.msk.bf16.gmra.mrb[12].mxu1 %vm477_vm2, %v5168_v16 }
  0xa1   : > { %3961 = vmatprep.mubr.msk.bf16.mxu1 %vm477_vm2, %v4701_v31 }
  0xa6   : > { %3800 = vmatmul.mubr.msk.bf16.vlgmr.msra.gmra.mrb[0].mxu0 %vm477_vm2, %v4718_v41 }
  0xa7   : > { %3816 = vmatpush3.bf16.msra.mxu0 %v1297_v19  ;;  %3803 = vmatprep.mubr.msk.bf16.mxu0 %vm477_vm2, %v4759_v2 }
  0xa8   : > { %3962 = vmatmul.mubr.msk.bf16.vlgmr.msra.gmra.mrb[0].mxu1 %vm477_vm2, %v4741_v53  ;;  %3833 = vmatprep.subr.bf16.mxu0 %v1448_v47 }
  0xa9   : > { %3978 = vmatpush3.bf16.msra.mxu1 %v2657_v32  ;;  %3965 = vmatprep.mubr.msk.bf16.mxu1 %vm477_vm2, %v4777_v22 }
  0xaa   : > { %3995 = vmatprep.subr.bf16.mxu1 %v2807_v17 }
  0xae   : > { %3804 = vmatmul.mubr.msk.bf16.gmra.mrb[4].mxu0 %vm477_vm2, %v4769_v13 }
  0xaf   : > { %3807 = vmatprep.mubr.msk.bf16.mxu0 %vm477_vm2, %v4842_v9 }
  0xb0   : > { %3966 = vmatmul.mubr.msk.bf16.gmra.mrb[4].mxu1 %vm477_vm2, %v4790_v50 }
  0xb1   : > { %3969 = vmatprep.mubr.msk.bf16.mxu1 %vm477_vm2, %v4863_v28 }
  0xb6   : > { %3808 = vmatmul.mubr.msk.bf16.gmra.mrb[8].mxu0 %vm477_vm2, %v4853_v60 }
  0xb7   : > { %3811 = vmatprep.mubr.msk.bf16.mxu0 %vm477_vm2, %v4931_v15 }
  0xb8   : > { %3970 = vmatmul.mubr.msk.bf16.gmra.mrb[8].mxu1 %vm477_vm2, %v4876_v35 }
  0xb9   : > { %3973 = vmatprep.mubr.msk.bf16.mxu1 %vm477_vm2, %v4953_v37 }
  0xbe   : > { %3812 = vmatmul.mubr.msk.bf16.gmra.mrb[12].mxu0 %vm477_vm2, %v4699_v26  ;;  %v2957_v26 = vand.u32 %v3522_v59, %v4545_v7 }
  0xbf   : > { %3817 = vmatprep.mubr.msk.bf16.mxu0 %vm477_vm2, %v5071_v48 }
  0xc0   : > { %3974 = vmatmul.mubr.msk.bf16.gmra.mrb[12].mxu1 %vm477_vm2, %v5210_v11 }
  0xc1   : > { %3979 = vmatprep.mubr.msk.bf16.mxu1 %vm477_vm2, %v5079_v18 }
  0xc6   : > { %3818 = vmatmul.mubr.msk.bf16.vlgmr.msra.gmra.mrb[0].mxu0 %vm477_vm2, %v5076_v4 }
  0xc7   : > { %3834 = vmatpush3.bf16.msra.mxu0 %v1448_v47  ;;  %3821 = vmatprep.mubr.msk.bf16.mxu0 %vm477_vm2, %v5092_v62 }
  0xc8   : > { %3980 = vmatmul.mubr.msk.bf16.vlgmr.msra.gmra.mrb[0].mxu1 %vm477_vm2, %v5083_v63  ;;  %3851 = vmatprep.subr.bf16.mxu0 %v1599_v46 }
  0xc9   : > { %3996 = vmatpush3.bf16.msra.mxu1 %v2807_v17  ;;  %3983 = vmatprep.mubr.msk.bf16.mxu1 %vm477_vm2, %v5096_v8 }
  0xca   : > { %4013 = vmatprep.subr.bf16.mxu1 %v2957_v26 }
  0xce   : > { %3822 = vmatmul.mubr.msk.bf16.gmra.mrb[4].mxu0 %vm477_vm2, %v5094_v0 }
  0xcf   : > { %3825 = vmatprep.mubr.msk.bf16.mxu0 %vm477_vm2, %v5108_v39 }
  0xd0   : > { %3984 = vmatmul.mubr.msk.bf16.gmra.mrb[4].mxu1 %vm477_vm2, %v5100_v23 }
  0xd1   : > { %3987 = vmatprep.mubr.msk.bf16.mxu1 %vm477_vm2, %v5112_v24 }
  0xd6   : > { %3826 = vmatmul.mubr.msk.bf16.gmra.mrb[8].mxu0 %vm477_vm2, %v5110_v21 }
  0xd7   : > { %3829 = vmatprep.mubr.msk.bf16.mxu0 %vm477_vm2, %v5124_v30 }
  0xd8   : > { %3988 = vmatmul.mubr.msk.bf16.gmra.mrb[8].mxu1 %vm477_vm2, %v5116_v3 }
  0xd9   : > { %3991 = vmatprep.mubr.msk.bf16.mxu1 %vm477_vm2, %v5126_v36 }
  0xde   : > { %3830 = vmatmul.mubr.msk.bf16.gmra.mrb[12].mxu0 %vm477_vm2, %v5061_v10 }
  0xdf   : > { %3835 = vmatprep.mubr.msk.bf16.mxu0 %vm477_vm2, %v4999_v54  ;;  %v3107_v54 = vand.u32 %v3531_v56, %v4545_v7  ;;  %v2780_v7 = vld [vmem:[#allocation2 + $0x88] sm:$0xff] }
  0xe0   : > { %3992 = vmatmul.mubr.msk.bf16.gmra.mrb[12].mxu1 %vm477_vm2, %v2630_v61 }
  0xe1   : > { %3997 = vmatprep.mubr.msk.bf16.mxu1 %vm477_vm2, %v5006_v40 }
  0xe6   : > { %3836 = vmatmul.mubr.msk.bf16.vlgmr.msra.gmra.mrb[0].mxu0 %vm477_vm2, %v5020_v29 }
  0xe7   : > { %3852 = vmatpush3.bf16.msra.mxu0 %v1599_v46  ;;  %3839 = vmatprep.mubr.msk.bf16.mxu0 %vm477_vm2, %v5022_v12 }
  0xe8   : > { %3998 = vmatmul.mubr.msk.bf16.vlgmr.msra.gmra.mrb[0].mxu1 %vm477_vm2, %v5024_v27  ;;  %3869 = vmatprep.subr.bf16.mxu0 %v1750_v5 }
  0xe9   : > { %4014 = vmatpush3.bf16.msra.mxu1 %v2957_v26  ;;  %4001 = vmatprep.mubr.msk.bf16.mxu1 %vm477_vm2, %v5028_v43 }
  0xea   : > { %4031 = vmatprep.subr.bf16.mxu1 %v3107_v54 }
  0xee   : > { %3840 = vmatmul.mubr.msk.bf16.gmra.mrb[4].mxu0 %vm477_vm2, %v5036_v34 }
  0xef   : > { %3843 = vmatprep.mubr.msk.bf16.mxu0 %vm477_vm2, %v5038_v1 }
  0xf0   : > { %4002 = vmatmul.mubr.msk.bf16.gmra.mrb[4].mxu1 %vm477_vm2, %v5040_v20 }
  0xf1   : > { %4005 = vmatprep.mubr.msk.bf16.mxu1 %vm477_vm2, %v5044_v25 }
  0xf6   : > { %3844 = vmatmul.mubr.msk.bf16.gmra.mrb[8].mxu0 %vm477_vm2, %v5055_v51 }
  0xf7   : > { %3847 = vmatprep.mubr.msk.bf16.mxu0 %vm477_vm2, %v4967_v44 }
  0xf8   : > { %4006 = vmatmul.mubr.msk.bf16.gmra.mrb[8].mxu1 %vm477_vm2, %v5057_v58 }
  0xf9   : > { %4009 = vmatprep.mubr.msk.bf16.mxu1 %vm477_vm2, %v5168_v16 }
  0xfe   : > { %3848 = vmatmul.mubr.msk.bf16.gmra.mrb[12].mxu0 %vm477_vm2, %v5002_v42 }
  0xff   : > { %3853 = vmatprep.mubr.msk.bf16.mxu0 %vm477_vm2, %v4718_v41  ;;  %v1570_v41 = vld [vmem:[#allocation2 + $0xd0] sm:$0xff] }
 0x100   : > { %4010 = vmatmul.mubr.msk.bf16.gmra.mrb[12].mxu1 %vm477_vm2, %v2780_v7 }
 0x101   : > { %4015 = vmatprep.mubr.msk.bf16.mxu1 %vm477_vm2, %v4741_v53  ;;  %v2930_v53 = vld [vmem:[#allocation2 + $0x118] sm:$0xff] }
 0x106   : > { %3854 = vmatmul.mubr.msk.bf16.vlgmr.msra.gmra.mrb[0].mxu0 %vm477_vm2, %v4759_v2 }
 0x107   : > { %3870 = vmatpush3.bf16.msra.mxu0 %v1750_v5  ;;  %3857 = vmatprep.mubr.msk.bf16.mxu0 %vm477_vm2, %v4769_v13 }
 0x108   : > { %4016 = vmatmul.mubr.msk.bf16.vlgmr.msra.gmra.mrb[0].mxu1 %vm477_vm2, %v4777_v22 }
 0x109   : > { %4032 = vmatpush3.bf16.msra.mxu1 %v3107_v54  ;;  %4019 = vmatprep.mubr.msk.bf16.mxu1 %vm477_vm2, %v4790_v50 }
 0x10e   : > { %3858 = vmatmul.mubr.msk.bf16.gmra.mrb[4].mxu0 %vm477_vm2, %v4842_v9 }
 0x10f   : > { %3861 = vmatprep.mubr.msk.bf16.mxu0 %vm477_vm2, %v4853_v60  ;;  %v5360_v60 = vld [vmem:[%s5519_s2] ss:$0 sm:$0xff] }
 0x110   : > { %4020 = vmatmul.mubr.msk.bf16.gmra.mrb[4].mxu1 %vm477_vm2, %v4863_v28 }
 0x111   : > { %4023 = vmatprep.mubr.msk.bf16.mxu1 %vm477_vm2, %v4876_v35 }
 0x116   : > { %3862 = vmatmul.mubr.msk.bf16.gmra.mrb[8].mxu0 %vm477_vm2, %v4931_v15 }
 0x117   : > { %3865 = vmatprep.mubr.msk.bf16.mxu0 %vm477_vm2, %v1570_v41 }
 0x118   : > { %4024 = vmatmul.mubr.msk.bf16.gmra.mrb[8].mxu1 %vm477_vm2, %v4953_v37 }
 0x119   : > { %4027 = vmatprep.mubr.msk.bf16.mxu1 %vm477_vm2, %v5210_v11 }
 0x11e   : > { %3866 = vmatmul.mubr.msk.bf16.gmra.mrb[12].mxu0 %vm477_vm2, %v4701_v31  ;;  %v3080_v31 = vld [vmem:[#allocation2 + $0x1a8] sm:$0xff] }
 0x11f   : > { %3871 = vmatprep.mubr.msk.bf16.mxu0 %vm477_vm2, %v5076_v4 }
 0x120   : > { %4028 = vmatmul.mubr.msk.bf16.gmra.mrb[12].mxu1 %vm477_vm2, %v2930_v53 }
 0x121   : > { %4033 = vmatprep.mubr.msk.bf16.mxu1 %vm477_vm2, %v5083_v63 }
 0x126   : > { %3872 = vmatmul.mubr.msk.bf16.vlgmr.msra.gmra.mrb[0].mxu0 %vm477_vm2, %v5092_v62 }
 0x127   : > { %3875 = vmatprep.mubr.msk.bf16.mxu0 %vm477_vm2, %v5094_v0 }
 0x128   : > { %4034 = vmatmul.mubr.msk.bf16.vlgmr.msra.gmra.mrb[0].mxu1 %vm477_vm2, %v5096_v8 }
 0x129   : > { %4037 = vmatprep.mubr.msk.bf16.mxu1 %vm477_vm2, %v5100_v23 }
 0x12e   : > { %3876 = vmatmul.mubr.msk.bf16.gmra.mrb[4].mxu0 %vm477_vm2, %v5108_v39 }
 0x12f   : > { %3879 = vmatprep.mubr.msk.bf16.mxu0 %vm477_vm2, %v5110_v21 }
 0x130   : > { %4038 = vmatmul.mubr.msk.bf16.gmra.mrb[4].mxu1 %vm477_vm2, %v5112_v24 }
 0x131   : > { %4041 = vmatprep.mubr.msk.bf16.mxu1 %vm477_vm2, %v5116_v3 }
 0x136   : > { %3880 = vmatmul.mubr.msk.bf16.gmra.mrb[8].mxu0 %vm477_vm2, %v5124_v30 }
 0x137   : > { %3883 = vmatprep.mubr.msk.bf16.mxu0 %vm477_vm2, %v5061_v10 }
 0x138   : > { %4042 = vmatmul.mubr.msk.bf16.gmra.mrb[8].mxu1 %vm477_vm2, %v5126_v36 }
 0x139   : > { %4045 = vmatprep.mubr.msk.bf16.mxu1 %vm477_vm2, %v2630_v61 }
 0x13e   : > { %3884 = vmatmul.mubr.msk.bf16.gmra.mrb[12].mxu0 %vm477_vm2, %v5079_v18 }
 0x140   : > { %4046 = vmatmul.mubr.msk.bf16.gmra.mrb[12].mxu1 %vm477_vm2, %v3080_v31 }
 0x1f9   : > { %v3873_v2 = vpop.f32.mrb[0].mxu0 }
 0x1fa   : > { %v1873_v9 = vadd.f32 %v3873_v2, %v5360_v60  ;;  %v1786_v13 = vpop.f32.mrb[1].mxu0 }
 0x1fb   : > { %v1871_v22 = vadd.f32 %v5360_v60, %v1786_v13  ;;  %v4035_v50 = vpop.f32.mrb[0].mxu1  ;;  %v3874_v28 = vpop.f32.mrb[2].mxu0 }
 0x1fc   : > { %1890 = vst.msk [vmem:[%s5364_s10 + $0x10] sm:$0xff] %vm1887_vm8, %v1873_v9  ;;  %v3224_v35 = vadd.f32 %v4035_v50, %v5360_v60  ;;  %v1874_v15 = vadd.f32 %v3874_v28, %v5360_v60  ;;  %v3143_v37 = vpop.f32.mrb[1].mxu1  ;;  %v1789_v44 = vpop.f32.mrb[3].mxu0 }
 0x1fd   : > { %1888 = vst.msk [vmem:[%s5364_s10] sm:$0xff] %vm1887_vm8, %v1871_v22  ;;  %v3222_v42 = vadd.f32 %v5360_v60, %v3143_v37  ;;  %v1872_v40 = vadd.f32 %v5360_v60, %v1789_v44  ;;  %v4036_v29 = vpop.f32.mrb[2].mxu1 }
 0x1fe   : > { %3542 = vst.msk [vmem:[%s5364_s10 + $0x90] sm:$0xff] %vm1887_vm8, %v3224_v35  ;;  %1891 = vst.msk [vmem:[%s5364_s10 + $0x18] sm:$0xff] %vm1887_vm8, %v1874_v15  ;;  %v3225_v12 = vadd.f32 %v4036_v29, %v5360_v60  ;;  %v3146_v27 = vpop.f32.mrb[3].mxu1 }
 0x1ff   : > { %3540 = vst.msk [vmem:[%s5364_s10 + $0x80] sm:$0xff] %vm1887_vm8, %v3222_v42  ;;  %1889 = vst.msk [vmem:[%s5364_s10 + $0x8] sm:$0xff] %vm1887_vm8, %v1872_v40  ;;  %v3223_v43 = vadd.f32 %v5360_v60, %v3146_v27 }
 0x200   : > { %3543 = vst.msk [vmem:[%s5364_s10 + $0x98] sm:$0xff] %vm1887_vm8, %v3225_v12 }
 0x201   : > { %3541 = vst.msk [vmem:[%s5364_s10 + $0x88] sm:$0xff] %vm1887_vm8, %v3223_v43  ;;  %v3877_v34 = vpop.f32.mrb[4].mxu0 }
 0x202   : > { %v1877_v1 = vadd.f32 %v3877_v34, %v5360_v60  ;;  %v1802_v20 = vpop.f32.mrb[5].mxu0 }
 0x203   : > { %v1875_v25 = vadd.f32 %v5360_v60, %v1802_v20  ;;  %v4039_v51 = vpop.f32.mrb[4].mxu1  ;;  %v3878_v58 = vpop.f32.mrb[6].mxu0 }
 0x204   : > { %1894 = vst.msk [vmem:[%s5364_s10 + $0x30] sm:$0xff] %vm1887_vm8, %v1877_v1  ;;  %v3228_v10 = vadd.f32 %v4039_v51, %v5360_v60  ;;  %v1878_v48 = vadd.f32 %v3878_v58, %v5360_v60  ;;  %v3159_v14 = vpop.f32.mrb[5].mxu1  ;;  %v1805_v4 = vpop.f32.mrb[7].mxu0 }
 0x205   : > { %1892 = vst.msk [vmem:[%s5364_s10 + $0x20] sm:$0xff] %vm1887_vm8, %v1875_v25  ;;  %v3226_v57 = vadd.f32 %v5360_v60, %v3159_v14  ;;  %v1876_v18 = vadd.f32 %v5360_v60, %v1805_v4  ;;  %v4040_v63 = vpop.f32.mrb[6].mxu1 }
 0x206   : > { %3546 = vst.msk [vmem:[%s5364_s10 + $0xb0] sm:$0xff] %vm1887_vm8, %v3228_v10  ;;  %1895 = vst.msk [vmem:[%s5364_s10 + $0x38] sm:$0xff] %vm1887_vm8, %v1878_v48  ;;  %v3229_v6 = vadd.f32 %v4040_v63, %v5360_v60  ;;  %v3162_v62 = vpop.f32.mrb[7].mxu1 }
 0x207   : > { %3544 = vst.msk [vmem:[%s5364_s10 + $0xa0] sm:$0xff] %vm1887_vm8, %v3226_v57  ;;  %1893 = vst.msk [vmem:[%s5364_s10 + $0x28] sm:$0xff] %vm1887_vm8, %v1876_v18  ;;  %v3227_v0 = vadd.f32 %v5360_v60, %v3162_v62 }
 0x208   : > { %3547 = vst.msk [vmem:[%s5364_s10 + $0xb8] sm:$0xff] %vm1887_vm8, %v3229_v6 }
 0x209   : > { %3545 = vst.msk [vmem:[%s5364_s10 + $0xa8] sm:$0xff] %vm1887_vm8, %v3227_v0  ;;  %v3881_v8 = vpop.f32.mrb[8].mxu0 }
 0x20a   : > { %v1881_v23 = vadd.f32 %v3881_v8, %v5360_v60  ;;  %v1818_v39 = vpop.f32.mrb[9].mxu0 }
 0x20b   : > { %v1879_v21 = vadd.f32 %v5360_v60, %v1818_v39  ;;  %v4043_v24 = vpop.f32.mrb[8].mxu1  ;;  %v3882_v3 = vpop.f32.mrb[10].mxu0 }
 0x20c   : > { %1898 = vst.msk [vmem:[%s5364_s10 + $0x50] sm:$0xff] %vm1887_vm8, %v1881_v23  ;;  %v3232_v30 = vadd.f32 %v4043_v24, %v5360_v60  ;;  %v1882_v36 = vadd.f32 %v3882_v3, %v5360_v60  ;;  %v3175_v55 = vpop.f32.mrb[9].mxu1  ;;  %v1821_v38 = vpop.f32.mrb[11].mxu0 }
 0x20d   : > { %1896 = vst.msk [vmem:[%s5364_s10 + $0x40] sm:$0xff] %vm1887_vm8, %v1879_v21  ;;  %v3230_v19 = vadd.f32 %v5360_v60, %v3175_v55  ;;  %v1880_v32 = vadd.f32 %v5360_v60, %v1821_v38  ;;  %v4044_v16 = vpop.f32.mrb[10].mxu1 }
 0x20e   : > { %3550 = vst.msk [vmem:[%s5364_s10 + $0xd0] sm:$0xff] %vm1887_vm8, %v3232_v30  ;;  %1899 = vst.msk [vmem:[%s5364_s10 + $0x58] sm:$0xff] %vm1887_vm8, %v1882_v36  ;;  %v3233_v45 = vadd.f32 %v4044_v16, %v5360_v60  ;;  %v3178_v33 = vpop.f32.mrb[11].mxu1 }
 0x20f   : > { %3548 = vst.msk [vmem:[%s5364_s10 + $0xc0] sm:$0xff] %vm1887_vm8, %v3230_v19  ;;  %1897 = vst.msk [vmem:[%s5364_s10 + $0x48] sm:$0xff] %vm1887_vm8, %v1880_v32  ;;  %v3231_v47 = vadd.f32 %v5360_v60, %v3178_v33 }
 0x210   : > { %3551 = vst.msk [vmem:[%s5364_s10 + $0xd8] sm:$0xff] %vm1887_vm8, %v3233_v45 }
 0x211   : > { %3549 = vst.msk [vmem:[%s5364_s10 + $0xc8] sm:$0xff] %vm1887_vm8, %v3231_v47  ;;  %v3885_v17 = vpop.f32.mrb[12].mxu0 }
 0x212   : > { %v1885_v11 = vadd.f32 %v3885_v17, %v5360_v60  ;;  %v1834_v52 = vpop.f32.mrb[13].mxu0 }
 0x213   : > { %v1883_v59 = vadd.f32 %v5360_v60, %v1834_v52  ;;  %v4047_v46 = vpop.f32.mrb[12].mxu1  ;;  %v3886_v26 = vpop.f32.mrb[14].mxu0 }
 0x214   : > { %1902 = vst.msk [vmem:[%s5364_s10 + $0x70] sm:$0xff] %vm1887_vm8, %v1885_v11  ;;  %v3236_v61 = vadd.f32 %v4047_v46, %v5360_v60  ;;  %v1886_v49 = vadd.f32 %v3886_v26, %v5360_v60  ;;  %v3191_v56 = vpop.f32.mrb[13].mxu1  ;;  %v1837_v5 = vpop.f32.mrb[15].mxu0 }
 0x215   : > { %1900 = vst.msk [vmem:[%s5364_s10 + $0x60] sm:$0xff] %vm1887_vm8, %v1883_v59  ;;  %v3234_v54 = vadd.f32 %v5360_v60, %v3191_v56  ;;  %v1884_v7 = vadd.f32 %v5360_v60, %v1837_v5  ;;  %v4048_v41 = vpop.f32.mrb[14].mxu1 }
 0x216   : > { %3554 = vst.msk [vmem:[%s5364_s10 + $0xf0] sm:$0xff] %vm1887_vm8, %v3236_v61  ;;  %1903 = vst.msk [vmem:[%s5364_s10 + $0x78] sm:$0xff] %vm1887_vm8, %v1886_v49  ;;  %v3237_v53 = vadd.f32 %v4048_v41, %v5360_v60  ;;  %v3194_v31 = vpop.f32.mrb[15].mxu1 }
 0x217   : > { %3552 = vst.msk [vmem:[%s5364_s10 + $0xe0] sm:$0xff] %vm1887_vm8, %v3234_v54  ;;  %1901 = vst.msk [vmem:[%s5364_s10 + $0x68] sm:$0xff] %vm1887_vm8, %v1884_v7  ;;  %v3235_v2 = vadd.f32 %v5360_v60, %v3194_v31 }
 0x218   : > { %3555 = vst.msk [vmem:[%s5364_s10 + $0xf8] sm:$0xff] %vm1887_vm8, %v3237_v53 }
 0x219   : > { %3553 = vst.msk [vmem:[%s5364_s10 + $0xe8] sm:$0xff] %vm1887_vm8, %v3235_v2 }
 0x21a   : > { %4377 = shalt.err (!%p4374_p5)
}
 0x21b   : > { %s4378_s30 = scalar_lea.hbm %s5456_s21, 4096  ;;  %s4382_s6 = scalar_lea.hbm %s5520_s3, 8192 }
 0x21c   : > { %p4379_p6 = scmp.ne.s32.totalorder %s5456_s21, %s4378_s30  ;;  %p4383_p10 = scmp.lt.u32.totalorder %s5456_s21, %s5520_s3 }
 0x21d   : > { %p4384_p11 = scmp.lt.u32.totalorder %s4382_s6, %s4378_s30  ;;  %p4386_p13 = scmp.lt.u32.totalorder %s4378_s30, %s5456_s21 }
 0x21e   : > { %p4380_p7 = pnand %p4379_p6, %p4509_p4 }
 0x21f   : > { %p4385_p12 = por %p4384_p11, %p4383_p10 }
 0x220   : > { %p4381_p9 = pneg %p4380_p7 }
 0x221   : > { %p4387_p0 = por %p4386_p13, %p4385_p12 }
 0x223   : > { %p4388_p1 = pnand %p4387_p0, %p4381_p9 }
 0x225   : > { %4391 = shalt.err (!%p4388_p1)
}
 0x226   : > { %s4447_s9 = smov 128   ;;  %s4448_s10 = smov 8  }
 0x227   : > { %4305 = dma.vmem_to_hbm [thread:$0]  (%p4509_p4), %s5458_s18, 4096, %s5456_s21, %s5471_s23, %s4447_s9, %s4447_s9, %s4448_s10  }
 0x228 PF: > { %p4311_p2 = scmp.ge.s32.totalorder %s4442_s17, 2  ;;  %s3285_s11 = sand.u32 1, %s4422_s12  }
 0x229   : > { %s3286_s15 = scalar_lea.sflag [#allocation4], %s3285_s11 }
 0x22a   : > { %p4308_p3 = pnand %p4311_p2, %p4516_p8 }
 0x22c   : > { %4417 = dma.done.wait (!%p4308_p3), %s3286_s15, 4096  }
 0x22d   : > { %4419 = vsyncadd (!%p4308_p3), %s3286_s15, 4294963200  ;;  %s16_s17 = sadd.s32 1, %s4442_s17   ;;  %s5539_s12 = smov %s4426_s13 }
 0x22e   : > { %p13_p5 = scmp.ge.s32.totalorder %s16_s17, 4   ;;  %s5540_s13 = smov %s4430_s14 }
 0x22f   : > { %s5541_s14 = smov %s4522_s25  ;;  %s5542_s15 = smov %s4438_s16 }
 0x230   : > { %s5543_s16 = smov %s5545_s20  ;;  %15 = sbr.rel (!%p13_p5) target bundleno = 4 (0x4), region = 102 }
 0x237   :  { %3291 = vsyncpa [#allocation4], 1 }
 0x238   :  { %3293 = vsyncpa [#allocation4 + $0x1], 1 }

</bundles_post_ra>
